<compile_context>
chip_gen: v7x
topology: tpu7x:2x2x1
jax: 0.10.0
libtpu: 0.0.40
codegen_flags: <defaults>
</compile_context>

<pallas_src>
import functools

import jax
import jax.numpy as jnp
from jax import lax
from jax.experimental import pallas as pl
from jax.experimental.pallas import tpu as pltpu


# --------------------------------- kernel ------------------------------------

def decoder_block_kernel(enc_ref, x_ref, w_ref, b_ref, out_ref,
                         *, num_heads, head_size, w_layout, b_layout):
    B, S, in_size = x_ref.shape
    _, Se, E = enc_ref.shape
    out_size = out_ref.shape[-1]
    H, hs = num_heads, head_size
    A = H * hs
    bf16 = jnp.bfloat16

    # ---- static slab carving (Python-int offsets -> zero runtime cost) ----
    def W(name):                      # bf16 weight view (rows, cols)
        off, r, c = w_layout[name]
        return w_ref[off:off + r, 0:c]

    def V(name):                      # f32 bias / LN row, shape (1, c)
        row, c = b_layout[name]
        return b_ref[row:row + 1, 0:c]

    # ---- hoisted batch-invariant values ----
    row_i = lax.broadcasted_iota(jnp.int32, (S, S), 0)
    col_i = lax.broadcasted_iota(jnp.int32, (S, S), 1)
    # additive mask bias: inner softmax does an ADD, not a select
    causal_bias = jnp.where(col_i <= row_i, 0.0, -1e30).astype(jnp.float32)

    x2d = x_ref[...].reshape(B * S, in_size)        # f32 (B*S, in)
    enc2d = enc_ref[...].reshape(B * Se, E)         # f32 (B*Se, E)

    def ln(x, gname, bname, eps=1e-5):
        # single-pass LayerNorm: one lane reduction instead of two
        mu = jnp.mean(x, axis=-1, keepdims=True)
        var = jnp.mean(x * x, axis=-1, keepdims=True) - mu * mu
        return (x - mu) * lax.rsqrt(var + eps) * V(gname) + V(bname)

    def mha(q2d, k2d, v2d, Sq, Sk, mask_bias):
        """q2d:(B*Sq, A), k2d/v2d:(B*Sk, A) f32 -> (B*Sq, A) f32.

        Heads + batch are merged into ONE leading batch dim (n = H*B) so each
        score / context matmul is a single batched einsum."""
        def split(t2d, L):
            # (B*L, H*hs) -> (H*B, L, hs): H lane slices + leading-dim reshape
            return jnp.stack([t2d[:, h * hs:(h + 1) * hs] for h in range(H)],
                             axis=0).reshape(H * B, L, hs).astype(bf16)

        qh, kh, vh = split(q2d, Sq), split(k2d, Sk), split(v2d, Sk)
        s = jnp.einsum('nqd,nkd->nqk', qh, kh,
                       preferred_element_type=jnp.float32) * (1.0 / hs ** 0.5)
        if mask_bias is not None:
            s = s + mask_bias                       # broadcast over (h, b)
        s = s - jnp.max(s, axis=-1, keepdims=True)
        p = jnp.exp(s)
        p = p * pl.reciprocal(jnp.sum(p, axis=-1, keepdims=True), approx=True)
        ctx = jnp.einsum('nqk,nkd->nqd', p.astype(bf16), vh,
                         preferred_element_type=jnp.float32)
        ctx = ctx.reshape(H, B * Sq, hs)
        return jnp.concatenate([ctx[h] for h in range(H)], axis=-1)  # (B*Sq, A)

    # --- 1. masked multi-head self-attention (fused QKV projection) ---------
    qkv = jnp.dot(x2d.astype(bf16), W("wqkv1"),
                  preferred_element_type=jnp.float32) + V("bqkv1")
    ctx1 = mha(qkv[:, 0 * A:1 * A], qkv[:, 1 * A:2 * A], qkv[:, 2 * A:3 * A],
               S, S, causal_bias)
    attn1 = jnp.dot(ctx1.astype(bf16), W("wo1"),
                    preferred_element_type=jnp.float32) + V("bo1")
    # adapt_residual == Identity (in_size == out_size); dropout == identity (eval)
    # TODO(synk): adapt_residual Linear path for in_size != out_size not implemented.
    n1 = ln(attn1 + x2d, "ln1_g", "ln1_b")

    # --- 2. cross attention vs encoder output (fused KV projection) ---------
    q2 = jnp.dot(n1.astype(bf16), W("wq2"),
                 preferred_element_type=jnp.float32) + V("bq2")
    kv2 = jnp.dot(enc2d.astype(bf16), W("wkv2"),
                  preferred_element_type=jnp.float32) + V("bkv2")
    ctx2 = mha(q2, kv2[:, :A], kv2[:, A:], S, Se, None)
    attn2 = jnp.dot(ctx2.astype(bf16), W("wo2"),
                    preferred_element_type=jnp.float32) + V("bo2")
    n2 = ln(attn2 + n1, "ln2_g", "ln2_b")

    # --- 3. FFN (Linear -> ReLU -> Linear) + residual + norm -----------------
    h1 = jnp.maximum(jnp.dot(n2.astype(bf16), W("wf1"),
                             preferred_element_type=jnp.float32) + V("bf1"), 0.0)
    ff = jnp.dot(h1.astype(bf16), W("wf2"),
                 preferred_element_type=jnp.float32) + V("bf2")
    out = ln(ff + n2, "ln3_g", "ln3_b")
    out_ref[...] = out.reshape(B, S, out_size).astype(out_ref.dtype)


# --------------------------------- wrapper ------------------------------------

def transformer_decoder_block(encoder_output, x, slabs, layouts, *,
                              num_heads, head_size, out_size,
                              batch_per_step=None):
    B, S, in_size = x.shape
    _, Se, E = encoder_output.shape
    assert in_size == out_size, "adapt_residual Identity path requires in_size == out_size"
    w_slab, b_slab = slabs
    w_layout, b_layout = layouts

    # One grid step over the whole batch by default: at these sizes the kernel
    # is overhead/DMA bound, and splitting across v7x's two TensorCores would
    # duplicate the parameter DMAs per core for a few microseconds of compute.
    # Pass batch_per_step=B//2 only when per-core work clearly dominates.
    if batch_per_step is None:
        batch_per_step = B
    assert B % batch_per_step == 0
    grid = (B // batch_per_step,)

    kernel = functools.partial(decoder_block_kernel,
                               num_heads=num_heads, head_size=head_size,
                               w_layout=w_layout, b_layout=b_layout)

    return pl.pallas_call(
        kernel,
        out_shape=jax.ShapeDtypeStruct((B, S, out_size), jnp.float32),
        grid_spec=pltpu.PrefetchScalarGridSpec(
            num_scalar_prefetch=0,
            grid=grid,
            in_specs=[
                pl.BlockSpec((batch_per_step, Se, E), lambda i: (i, 0, 0)),
                pl.BlockSpec((batch_per_step, S, in_size), lambda i: (i, 0, 0)),
                # packed parameter slabs: constant index map -> fetched once
                pl.BlockSpec(w_slab.shape, lambda i: (0, 0)),
                pl.BlockSpec(b_slab.shape, lambda i: (0, 0)),
            ],
            out_specs=pl.BlockSpec((batch_per_step, S, out_size),
                                   lambda i: (i, 0, 0)),
        ),
        compiler_params=pltpu.CompilerParams(
            dimension_semantics=("parallel",),
            # Working set here is KBs; re-derive this (and tile sizes) against
            # v7x's 64 MiB VMEM when the block is scaled to real model widths.
            vmem_limit_bytes=32 * 1024 * 1024),
    )(encoder_output, x, w_slab, b_slab)


# ------------------------------ parameter init --------------------------------

def init_params(key, in_size, out_size, head_size, num_heads,
                fc_hidden_size, encoder_out_size):
    """Raw parameters (f32, weights stored (in, out) so y = x @ W + b)."""
    A = head_size * num_heads
    ks = iter(jax.random.split(key, 16))

    def rnd(shape, scale=0.05):
        return jax.random.normal(next(ks), shape, jnp.float32) * scale

    weights = {
        # masked self-attention: fused QKV, output projection
        "wqkv1": rnd((in_size, 3 * A)),
        "wo1":   rnd((A, out_size)),
        # cross attention: Q proj, fused KV proj, output projection
        "wq2":   rnd((out_size, A)),
        "wkv2":  rnd((encoder_out_size, 2 * A)),
        "wo2":   rnd((A, out_size)),
        # FFN
        "wf1":   rnd((out_size, fc_hidden_size)),
        "wf2":   rnd((fc_hidden_size, out_size)),
    }
    biases = {
        "bqkv1": rnd((3 * A,)),
        "bo1":   rnd((out_size,)),
        "bq2":   rnd((A,)),
        "bkv2":  rnd((2 * A,)),
        "bo2":   rnd((out_size,)),
        "bf1":   rnd((fc_hidden_size,)),
        "bf2":   rnd((out_size,)),
        # LayerNorms: post-self-attn, post-cross-attn, post-ffn
        "ln1_g": jnp.ones((out_size,), jnp.float32),
        "ln1_b": jnp.zeros((out_size,), jnp.float32),
        "ln2_g": jnp.ones((out_size,), jnp.float32),
        "ln2_b": jnp.zeros((out_size,), jnp.float32),
        "ln3_g": jnp.ones((out_size,), jnp.float32),
        "ln3_b": jnp.zeros((out_size,), jnp.float32),
    }
    return weights, biases


def pack_params(weights, biases):
    """Pack all params into 2 slabs (bf16 weights, f32 biases/LN) -> 2 DMAs."""
    LANE, SUB_BF16, SUB_F32 = 128, 16, 8

    def rup(v, m):
        return (v + m - 1) // m * m

    # bf16 weight slab: row-stacked, columns padded to a common 128-multiple.
    w_cols = rup(max(w.shape[1] for w in weights.values()), LANE)
    w_layout, rows = {}, 0
    for name, w in weights.items():
        w_layout[name] = (rows, w.shape[0], w.shape[1])
        rows += rup(w.shape[0], SUB_BF16)
    w_slab = jnp.zeros((rup(rows, SUB_BF16), w_cols), jnp.bfloat16)
    for name, w in weights.items():
        off, r, c = w_layout[name]
        w_slab = w_slab.at[off:off + r, :c].set(w.astype(jnp.bfloat16))

    # f32 bias / LayerNorm slab: one row per vector.
    b_cols = rup(max(b.shape[0] for b in biases.values()), LANE)
    b_layout = {name: (i, b.shape[0]) for i, (name, b) in enumerate(biases.items())}
    b_slab = jnp.zeros((rup(len(biases), SUB_F32), b_cols), jnp.float32)
    for name, b in biases.items():
        row, c = b_layout[name]
        b_slab = b_slab.at[row, :c].set(b)

    return (w_slab, b_slab), (w_layout, b_layout)


# ----------------------------------- main --------------------------------------

if __name__ == "__main__":
    # Module hyper-parameters (in_size == out_size -> adapt_residual is Identity).
    in_size = 32
    out_size = 32
    head_size = 16
    num_heads = 2
    dropout_p = 0.1           # eval mode -> dropout is identity
    fc_hidden_size = 64
    encoder_out_size = 48

    B, S, S_enc = 2, 8, 10

    key = jax.random.PRNGKey(0)
    k_enc, k_x, k_p = jax.random.split(key, 3)
    encoder_output = jax.random.normal(k_enc, (B, S_enc, encoder_out_size),
                                       jnp.float32)
    x = jax.random.normal(k_x, (B, S, in_size), jnp.float32)

    weights, biases = init_params(k_p, in_size, out_size, head_size, num_heads,
                                  fc_hidden_size, encoder_out_size)
    slabs, layouts = pack_params(weights, biases)

    out = transformer_decoder_block(encoder_output, x, slabs, layouts,
                                    num_heads=num_heads, head_size=head_size,
                                    out_size=out_size)
    out = jax.block_until_ready(out)
    assert out.shape == (B, S, out_size)
    assert bool(jnp.all(jnp.isfinite(out)))
    print("KERNEL_OK")
</pallas_src>

<mosaic_0001>
module attributes {stable_mosaic.version = 11 : i64} {
  func.func @decoder_block_kernel(%arg0: i32, %arg1: memref<2x10x48xf32, #tpu.memory_space<vmem>>, %arg2: memref<2x8x32xf32, #tpu.memory_space<vmem>>, %arg3: memref<272x128xbf16, #tpu.memory_space<vmem>>, %arg4: memref<16x128xf32, #tpu.memory_space<vmem>>, %arg5: memref<2x8x32xf32, #tpu.memory_space<vmem>>) attributes {dimension_semantics = [#tpu.dimension_semantics<parallel>], iteration_bounds = array<i64: 1>, scalar_prefetch = 0 : i64, scratch_operands = 0 : i64, tpu.core_type = #tpu.core_type<tc>, window_params = [{transform_indices = @transform_0, window_bounds = array<i64: 2, 10, 48>}, {transform_indices = @transform_1, window_bounds = array<i64: 2, 8, 32>}, {pipeline_mode = #tpu.pipeline_mode<synchronous>, transform_indices = @transform_2, window_bounds = array<i64: 272, 128>}, {pipeline_mode = #tpu.pipeline_mode<synchronous>, transform_indices = @transform_3, window_bounds = array<i64: 16, 128>}, {transform_indices = @transform_4, window_bounds = array<i64: 2, 8, 32>}]} {
    %0 = tpu.iota {dimensions = array<i32: 0>} : vector<8x8xi32>
    %1 = tpu.iota {dimensions = array<i32: 1>} : vector<8x8xi32>
    %2 = arith.cmpi sle, %1, %0 : vector<8x8xi32>
    %cst = arith.constant 0.000000e+00 : f32
    %cst_0 = arith.constant -1.000000e+30 : f32
    %3 = vector.broadcast %cst : f32 to vector<8x8xf32>
    %4 = vector.broadcast %cst_0 : f32 to vector<8x8xf32>
    %5 = arith.select %2, %3, %4 : vector<8x8xi1>, vector<8x8xf32>
    %c0 = arith.constant 0 : index
    %c0_1 = arith.constant 0 : index
    %c0_2 = arith.constant 0 : index
    %6 = vector.load %arg2[%c0, %c0_1, %c0_2] : memref<2x8x32xf32, #tpu.memory_space<vmem>>, vector<2x8x32xf32>
    %7 = vector.shape_cast %6 : vector<2x8x32xf32> to vector<16x32xf32>
    %c0_3 = arith.constant 0 : index
    %c0_4 = arith.constant 0 : index
    %c0_5 = arith.constant 0 : index
    %8 = vector.load %arg1[%c0_3, %c0_4, %c0_5] : memref<2x10x48xf32, #tpu.memory_space<vmem>>, vector<2x10x48xf32>
    %9 = vector.shape_cast %8 : vector<2x10x48xf32> to vector<20x48xf32>
    %10 = arith.truncf %7 : vector<16x32xf32> to vector<16x32xbf16>
    %c0_6 = arith.constant 0 : index
    %c0_7 = arith.constant 0 : index
    %11 = vector.load %arg3[%c0_6, %c0_7] : memref<272x128xbf16, #tpu.memory_space<vmem>>, vector<32x96xbf16>
    %cst_8 = arith.constant dense<0.000000e+00> : vector<16x96xf32>
    %12 = tpu.matmul %10, %11, %cst_8 {dimension_numbers = #tpu.dot_dimension_numbers<[1], [0], [0], [1], [0, 0, 1, 1], [], []>} : vector<16x32xbf16>, vector<32x96xbf16>, vector<16x96xf32> -> vector<16x96xf32>
    %c0_9 = arith.constant 0 : index
    %c0_10 = arith.constant 0 : index
    %13 = vector.load %arg4[%c0_9, %c0_10] : memref<16x128xf32, #tpu.memory_space<vmem>>, vector<1x96xf32>
    %14 = vector.broadcast %13 : vector<1x96xf32> to vector<16x96xf32>
    %15 = arith.addf %12, %14 : vector<16x96xf32>
    %16 = vector.extract_strided_slice %15 {offsets = [0, 0], sizes = [16, 32], strides = [1, 1]} : vector<16x96xf32> to vector<16x32xf32>
    %17 = vector.extract_strided_slice %15 {offsets = [0, 32], sizes = [16, 32], strides = [1, 1]} : vector<16x96xf32> to vector<16x32xf32>
    %18 = vector.extract_strided_slice %15 {offsets = [0, 64], sizes = [16, 32], strides = [1, 1]} : vector<16x96xf32> to vector<16x32xf32>
    %19 = vector.extract_strided_slice %16 {offsets = [0, 0], sizes = [16, 16], strides = [1, 1]} : vector<16x32xf32> to vector<16x16xf32>
    %20 = vector.extract_strided_slice %16 {offsets = [0, 16], sizes = [16, 16], strides = [1, 1]} : vector<16x32xf32> to vector<16x16xf32>
    %21 = vector.shape_cast %19 : vector<16x16xf32> to vector<1x16x16xf32>
    %22 = vector.shape_cast %20 : vector<16x16xf32> to vector<1x16x16xf32>
    %23 = tpu.concatenate %21, %22 in 0 : vector<1x16x16xf32>, vector<1x16x16xf32> -> vector<2x16x16xf32>
    %24 = vector.shape_cast %23 : vector<2x16x16xf32> to vector<4x8x16xf32>
    %25 = arith.truncf %24 : vector<4x8x16xf32> to vector<4x8x16xbf16>
    %26 = vector.extract_strided_slice %17 {offsets = [0, 0], sizes = [16, 16], strides = [1, 1]} : vector<16x32xf32> to vector<16x16xf32>
    %27 = vector.extract_strided_slice %17 {offsets = [0, 16], sizes = [16, 16], strides = [1, 1]} : vector<16x32xf32> to vector<16x16xf32>
    %28 = vector.shape_cast %26 : vector<16x16xf32> to vector<1x16x16xf32>
    %29 = vector.shape_cast %27 : vector<16x16xf32> to vector<1x16x16xf32>
    %30 = tpu.concatenate %28, %29 in 0 : vector<1x16x16xf32>, vector<1x16x16xf32> -> vector<2x16x16xf32>
    %31 = vector.shape_cast %30 : vector<2x16x16xf32> to vector<4x8x16xf32>
    %32 = arith.truncf %31 : vector<4x8x16xf32> to vector<4x8x16xbf16>
    %33 = vector.extract_strided_slice %18 {offsets = [0, 0], sizes = [16, 16], strides = [1, 1]} : vector<16x32xf32> to vector<16x16xf32>
    %34 = vector.extract_strided_slice %18 {offsets = [0, 16], sizes = [16, 16], strides = [1, 1]} : vector<16x32xf32> to vector<16x16xf32>
    %35 = vector.shape_cast %33 : vector<16x16xf32> to vector<1x16x16xf32>
    %36 = vector.shape_cast %34 : vector<16x16xf32> to vector<1x16x16xf32>
    %37 = tpu.concatenate %35, %36 in 0 : vector<1x16x16xf32>, vector<1x16x16xf32> -> vector<2x16x16xf32>
    %38 = vector.shape_cast %37 : vector<2x16x16xf32> to vector<4x8x16xf32>
    %39 = arith.truncf %38 : vector<4x8x16xf32> to vector<4x8x16xbf16>
    "tpu.trace_start"() <{level = 10 : i32, message = "nqd,nkd->nqk"}> : () -> ()
    %cst_11 = arith.constant dense<0.000000e+00> : vector<4x8x8xf32>
    %40 = tpu.matmul %25, %32, %cst_11 {dimension_numbers = #tpu.dot_dimension_numbers<[2], [2], [1], [1], [0, 0, 0, 1, 1, 1], [0], [0]>} : vector<4x8x16xbf16>, vector<4x8x16xbf16>, vector<4x8x8xf32> -> vector<4x8x8xf32>
    "tpu.trace_stop"() : () -> ()
    %cst_12 = arith.constant 2.500000e-01 : f32
    %41 = vector.broadcast %cst_12 : f32 to vector<4x8x8xf32>
    %42 = arith.mulf %40, %41 : vector<4x8x8xf32>
    %43 = vector.shape_cast %5 : vector<8x8xf32> to vector<1x8x8xf32>
    %44 = vector.broadcast %43 : vector<1x8x8xf32> to vector<4x8x8xf32>
    %45 = arith.addf %42, %44 : vector<4x8x8xf32>
    %cst_13 = arith.constant dense<0xFF800000> : vector<4x8xf32>
    %46 = vector.multi_reduction <maximumf>, %45, %cst_13 [2] : vector<4x8x8xf32> to vector<4x8xf32>
    %47 = vector.shape_cast %46 : vector<4x8xf32> to vector<4x8x1xf32>
    %48 = vector.broadcast %47 : vector<4x8x1xf32> to vector<4x8x8xf32>
    %49 = arith.subf %45, %48 : vector<4x8x8xf32>
    %50 = math.exp %49 : vector<4x8x8xf32>
    %cst_14 = arith.constant dense<0.000000e+00> : vector<4x8xf32>
    %51 = vector.multi_reduction <add>, %50, %cst_14 [2] : vector<4x8x8xf32> to vector<4x8xf32>
    %52 = vector.shape_cast %51 : vector<4x8xf32> to vector<4x8x1xf32>
    %53 = tpu.reciprocal %52 {approx = true} : vector<4x8x1xf32> -> vector<4x8x1xf32>
    %54 = vector.broadcast %53 : vector<4x8x1xf32> to vector<4x8x8xf32>
    %55 = arith.mulf %50, %54 : vector<4x8x8xf32>
    %56 = arith.truncf %55 : vector<4x8x8xf32> to vector<4x8x8xbf16>
    "tpu.trace_start"() <{level = 10 : i32, message = "nqk,nkd->nqd"}> : () -> ()
    %cst_15 = arith.constant dense<0.000000e+00> : vector<4x8x16xf32>
    %57 = tpu.matmul %56, %39, %cst_15 {dimension_numbers = #tpu.dot_dimension_numbers<[2], [1], [1], [2], [0, 0, 0, 1, 1, 2], [0], [0]>} : vector<4x8x8xbf16>, vector<4x8x16xbf16>, vector<4x8x16xf32> -> vector<4x8x16xf32>
    "tpu.trace_stop"() : () -> ()
    %58 = vector.shape_cast %57 : vector<4x8x16xf32> to vector<2x16x16xf32>
    %59 = vector.extract_strided_slice %58 {offsets = [0, 0, 0], sizes = [1, 16, 16], strides = [1, 1, 1]} : vector<2x16x16xf32> to vector<1x16x16xf32>
    %60 = vector.shape_cast %59 : vector<1x16x16xf32> to vector<16x16xf32>
    %61 = vector.extract_strided_slice %58 {offsets = [1, 0, 0], sizes = [1, 16, 16], strides = [1, 1, 1]} : vector<2x16x16xf32> to vector<1x16x16xf32>
    %62 = vector.shape_cast %61 : vector<1x16x16xf32> to vector<16x16xf32>
    %63 = tpu.concatenate %60, %62 in 1 : vector<16x16xf32>, vector<16x16xf32> -> vector<16x32xf32>
    %64 = arith.truncf %63 : vector<16x32xf32> to vector<16x32xbf16>
    %c32 = arith.constant 32 : index
    %c0_16 = arith.constant 0 : index
    %65 = vector.load %arg3[%c32, %c0_16] : memref<272x128xbf16, #tpu.memory_space<vmem>>, vector<32x32xbf16>
    %cst_17 = arith.constant dense<0.000000e+00> : vector<16x32xf32>
    %66 = tpu.matmul %64, %65, %cst_17 {dimension_numbers = #tpu.dot_dimension_numbers<[1], [0], [0], [1], [0, 0, 1, 1], [], []>} : vector<16x32xbf16>, vector<32x32xbf16>, vector<16x32xf32> -> vector<16x32xf32>
    %c1 = arith.constant 1 : index
    %c0_18 = arith.constant 0 : index
    %67 = vector.load %arg4[%c1, %c0_18] : memref<16x128xf32, #tpu.memory_space<vmem>>, vector<1x32xf32>
    %68 = vector.broadcast %67 : vector<1x32xf32> to vector<16x32xf32>
    %69 = arith.addf %66, %68 : vector<16x32xf32>
    %70 = arith.addf %69, %7 : vector<16x32xf32>
    %cst_19 = arith.constant dense<0.000000e+00> : vector<16xf32>
    %71 = vector.multi_reduction <add>, %70, %cst_19 [1] : vector<16x32xf32> to vector<16xf32>
    %72 = vector.shape_cast %71 : vector<16xf32> to vector<16x1xf32>
    %cst_20 = arith.constant 3.200000e+01 : f32
    %73 = vector.broadcast %cst_20 : f32 to vector<16x1xf32>
    %74 = arith.divf %72, %73 : vector<16x1xf32>
    %75 = arith.mulf %70, %70 : vector<16x32xf32>
    %cst_21 = arith.constant dense<0.000000e+00> : vector<16xf32>
    %76 = vector.multi_reduction <add>, %75, %cst_21 [1] : vector<16x32xf32> to vector<16xf32>
    %77 = vector.shape_cast %76 : vector<16xf32> to vector<16x1xf32>
    %cst_22 = arith.constant 3.200000e+01 : f32
    %78 = vector.broadcast %cst_22 : f32 to vector<16x1xf32>
    %79 = arith.divf %77, %78 : vector<16x1xf32>
    %80 = arith.mulf %74, %74 : vector<16x1xf32>
    %81 = arith.subf %79, %80 : vector<16x1xf32>
    %82 = vector.broadcast %74 : vector<16x1xf32> to vector<16x32xf32>
    %83 = arith.subf %70, %82 : vector<16x32xf32>
    %cst_23 = arith.constant 9.99999974E-6 : f32
    %84 = vector.broadcast %cst_23 : f32 to vector<16x1xf32>
    %85 = arith.addf %81, %84 : vector<16x1xf32>
    %86 = math.rsqrt %85 : vector<16x1xf32>
    %87 = vector.broadcast %86 : vector<16x1xf32> to vector<16x32xf32>
    %88 = arith.mulf %83, %87 : vector<16x32xf32>
    %c7 = arith.constant 7 : index
    %c0_24 = arith.constant 0 : index
    %89 = vector.load %arg4[%c7, %c0_24] : memref<16x128xf32, #tpu.memory_space<vmem>>, vector<1x32xf32>
    %90 = vector.broadcast %89 : vector<1x32xf32> to vector<16x32xf32>
    %91 = arith.mulf %88, %90 : vector<16x32xf32>
    %c8 = arith.constant 8 : index
    %c0_25 = arith.constant 0 : index
    %92 = vector.load %arg4[%c8, %c0_25] : memref<16x128xf32, #tpu.memory_space<vmem>>, vector<1x32xf32>
    %93 = vector.broadcast %92 : vector<1x32xf32> to vector<16x32xf32>
    %94 = arith.addf %91, %93 : vector<16x32xf32>
    %95 = arith.truncf %94 : vector<16x32xf32> to vector<16x32xbf16>
    %c64 = arith.constant 64 : index
    %c0_26 = arith.constant 0 : index
    %96 = vector.load %arg3[%c64, %c0_26] : memref<272x128xbf16, #tpu.memory_space<vmem>>, vector<32x32xbf16>
    %cst_27 = arith.constant dense<0.000000e+00> : vector<16x32xf32>
    %97 = tpu.matmul %95, %96, %cst_27 {dimension_numbers = #tpu.dot_dimension_numbers<[1], [0], [0], [1], [0, 0, 1, 1], [], []>} : vector<16x32xbf16>, vector<32x32xbf16>, vector<16x32xf32> -> vector<16x32xf32>
    %c2 = arith.constant 2 : index
    %c0_28 = arith.constant 0 : index
    %98 = vector.load %arg4[%c2, %c0_28] : memref<16x128xf32, #tpu.memory_space<vmem>>, vector<1x32xf32>
    %99 = vector.broadcast %98 : vector<1x32xf32> to vector<16x32xf32>
    %100 = arith.addf %97, %99 : vector<16x32xf32>
    %101 = arith.truncf %9 : vector<20x48xf32> to vector<20x48xbf16>
    %c96 = arith.constant 96 : index
    %c0_29 = arith.constant 0 : index
    %102 = vector.load %arg3[%c96, %c0_29] : memref<272x128xbf16, #tpu.memory_space<vmem>>, vector<48x64xbf16>
    %cst_30 = arith.constant dense<0.000000e+00> : vector<20x64xf32>
    %103 = tpu.matmul %101, %102, %cst_30 {dimension_numbers = #tpu.dot_dimension_numbers<[1], [0], [0], [1], [0, 0, 1, 1], [], []>} : vector<20x48xbf16>, vector<48x64xbf16>, vector<20x64xf32> -> vector<20x64xf32>
    %c3 = arith.constant 3 : index
    %c0_31 = arith.constant 0 : index
    %104 = vector.load %arg4[%c3, %c0_31] : memref<16x128xf32, #tpu.memory_space<vmem>>, vector<1x64xf32>
    %105 = vector.broadcast %104 : vector<1x64xf32> to vector<20x64xf32>
    %106 = arith.addf %103, %105 : vector<20x64xf32>
    %107 = vector.extract_strided_slice %106 {offsets = [0, 0], sizes = [20, 32], strides = [1, 1]} : vector<20x64xf32> to vector<20x32xf32>
    %108 = vector.extract_strided_slice %106 {offsets = [0, 32], sizes = [20, 32], strides = [1, 1]} : vector<20x64xf32> to vector<20x32xf32>
    %109 = vector.extract_strided_slice %100 {offsets = [0, 0], sizes = [16, 16], strides = [1, 1]} : vector<16x32xf32> to vector<16x16xf32>
    %110 = vector.extract_strided_slice %100 {offsets = [0, 16], sizes = [16, 16], strides = [1, 1]} : vector<16x32xf32> to vector<16x16xf32>
    %111 = vector.shape_cast %109 : vector<16x16xf32> to vector<1x16x16xf32>
    %112 = vector.shape_cast %110 : vector<16x16xf32> to vector<1x16x16xf32>
    %113 = tpu.concatenate %111, %112 in 0 : vector<1x16x16xf32>, vector<1x16x16xf32> -> vector<2x16x16xf32>
    %114 = vector.shape_cast %113 : vector<2x16x16xf32> to vector<4x8x16xf32>
    %115 = arith.truncf %114 : vector<4x8x16xf32> to vector<4x8x16xbf16>
    %116 = vector.extract_strided_slice %107 {offsets = [0, 0], sizes = [20, 16], strides = [1, 1]} : vector<20x32xf32> to vector<20x16xf32>
    %117 = vector.extract_strided_slice %107 {offsets = [0, 16], sizes = [20, 16], strides = [1, 1]} : vector<20x32xf32> to vector<20x16xf32>
    %118 = vector.shape_cast %116 : vector<20x16xf32> to vector<1x20x16xf32>
    %119 = vector.shape_cast %117 : vector<20x16xf32> to vector<1x20x16xf32>
    %120 = tpu.concatenate %118, %119 in 0 : vector<1x20x16xf32>, vector<1x20x16xf32> -> vector<2x20x16xf32>
    %121 = vector.shape_cast %120 : vector<2x20x16xf32> to vector<4x10x16xf32>
    %122 = arith.truncf %121 : vector<4x10x16xf32> to vector<4x10x16xbf16>
    %123 = vector.extract_strided_slice %108 {offsets = [0, 0], sizes = [20, 16], strides = [1, 1]} : vector<20x32xf32> to vector<20x16xf32>
    %124 = vector.extract_strided_slice %108 {offsets = [0, 16], sizes = [20, 16], strides = [1, 1]} : vector<20x32xf32> to vector<20x16xf32>
    %125 = vector.shape_cast %123 : vector<20x16xf32> to vector<1x20x16xf32>
    %126 = vector.shape_cast %124 : vector<20x16xf32> to vector<1x20x16xf32>
    %127 = tpu.concatenate %125, %126 in 0 : vector<1x20x16xf32>, vector<1x20x16xf32> -> vector<2x20x16xf32>
    %128 = vector.shape_cast %127 : vector<2x20x16xf32> to vector<4x10x16xf32>
    %129 = arith.truncf %128 : vector<4x10x16xf32> to vector<4x10x16xbf16>
    "tpu.trace_start"() <{level = 10 : i32, message = "nqd,nkd->nqk"}> : () -> ()
    %cst_32 = arith.constant dense<0.000000e+00> : vector<4x8x10xf32>
    %130 = tpu.matmul %115, %122, %cst_32 {dimension_numbers = #tpu.dot_dimension_numbers<[2], [2], [1], [1], [0, 0, 0, 1, 1, 1], [0], [0]>} : vector<4x8x16xbf16>, vector<4x10x16xbf16>, vector<4x8x10xf32> -> vector<4x8x10xf32>
    "tpu.trace_stop"() : () -> ()
    %cst_33 = arith.constant 2.500000e-01 : f32
    %131 = vector.broadcast %cst_33 : f32 to vector<4x8x10xf32>
    %132 = arith.mulf %130, %131 : vector<4x8x10xf32>
    %cst_34 = arith.constant dense<0xFF800000> : vector<4x8xf32>
    %133 = vector.multi_reduction <maximumf>, %132, %cst_34 [2] : vector<4x8x10xf32> to vector<4x8xf32>
    %134 = vector.shape_cast %133 : vector<4x8xf32> to vector<4x8x1xf32>
    %135 = vector.broadcast %134 : vector<4x8x1xf32> to vector<4x8x10xf32>
    %136 = arith.subf %132, %135 : vector<4x8x10xf32>
    %137 = math.exp %136 : vector<4x8x10xf32>
    %cst_35 = arith.constant dense<0.000000e+00> : vector<4x8xf32>
    %138 = vector.multi_reduction <add>, %137, %cst_35 [2] : vector<4x8x10xf32> to vector<4x8xf32>
    %139 = vector.shape_cast %138 : vector<4x8xf32> to vector<4x8x1xf32>
    %140 = tpu.reciprocal %139 {approx = true} : vector<4x8x1xf32> -> vector<4x8x1xf32>
    %141 = vector.broadcast %140 : vector<4x8x1xf32> to vector<4x8x10xf32>
    %142 = arith.mulf %137, %141 : vector<4x8x10xf32>
    %143 = arith.truncf %142 : vector<4x8x10xf32> to vector<4x8x10xbf16>
    "tpu.trace_start"() <{level = 10 : i32, message = "nqk,nkd->nqd"}> : () -> ()
    %cst_36 = arith.constant dense<0.000000e+00> : vector<4x8x16xf32>
    %144 = tpu.matmul %143, %129, %cst_36 {dimension_numbers = #tpu.dot_dimension_numbers<[2], [1], [1], [2], [0, 0, 0, 1, 1, 2], [0], [0]>} : vector<4x8x10xbf16>, vector<4x10x16xbf16>, vector<4x8x16xf32> -> vector<4x8x16xf32>
    "tpu.trace_stop"() : () -> ()
    %145 = vector.shape_cast %144 : vector<4x8x16xf32> to vector<2x16x16xf32>
    %146 = vector.extract_strided_slice %145 {offsets = [0, 0, 0], sizes = [1, 16, 16], strides = [1, 1, 1]} : vector<2x16x16xf32> to vector<1x16x16xf32>
    %147 = vector.shape_cast %146 : vector<1x16x16xf32> to vector<16x16xf32>
    %148 = vector.extract_strided_slice %145 {offsets = [1, 0, 0], sizes = [1, 16, 16], strides = [1, 1, 1]} : vector<2x16x16xf32> to vector<1x16x16xf32>
    %149 = vector.shape_cast %148 : vector<1x16x16xf32> to vector<16x16xf32>
    %150 = tpu.concatenate %147, %149 in 1 : vector<16x16xf32>, vector<16x16xf32> -> vector<16x32xf32>
    %151 = arith.truncf %150 : vector<16x32xf32> to vector<16x32xbf16>
    %c144 = arith.constant 144 : index
    %c0_37 = arith.constant 0 : index
    %152 = vector.load %arg3[%c144, %c0_37] : memref<272x128xbf16, #tpu.memory_space<vmem>>, vector<32x32xbf16>
    %cst_38 = arith.constant dense<0.000000e+00> : vector<16x32xf32>
    %153 = tpu.matmul %151, %152, %cst_38 {dimension_numbers = #tpu.dot_dimension_numbers<[1], [0], [0], [1], [0, 0, 1, 1], [], []>} : vector<16x32xbf16>, vector<32x32xbf16>, vector<16x32xf32> -> vector<16x32xf32>
    %c4 = arith.constant 4 : index
    %c0_39 = arith.constant 0 : index
    %154 = vector.load %arg4[%c4, %c0_39] : memref<16x128xf32, #tpu.memory_space<vmem>>, vector<1x32xf32>
    %155 = vector.broadcast %154 : vector<1x32xf32> to vector<16x32xf32>
    %156 = arith.addf %153, %155 : vector<16x32xf32>
    %157 = arith.addf %156, %94 : vector<16x32xf32>
    %cst_40 = arith.constant dense<0.000000e+00> : vector<16xf32>
    %158 = vector.multi_reduction <add>, %157, %cst_40 [1] : vector<16x32xf32> to vector<16xf32>
    %159 = vector.shape_cast %158 : vector<16xf32> to vector<16x1xf32>
    %cst_41 = arith.constant 3.200000e+01 : f32
    %160 = vector.broadcast %cst_41 : f32 to vector<16x1xf32>
    %161 = arith.divf %159, %160 : vector<16x1xf32>
    %162 = arith.mulf %157, %157 : vector<16x32xf32>
    %cst_42 = arith.constant dense<0.000000e+00> : vector<16xf32>
    %163 = vector.multi_reduction <add>, %162, %cst_42 [1] : vector<16x32xf32> to vector<16xf32>
    %164 = vector.shape_cast %163 : vector<16xf32> to vector<16x1xf32>
    %cst_43 = arith.constant 3.200000e+01 : f32
    %165 = vector.broadcast %cst_43 : f32 to vector<16x1xf32>
    %166 = arith.divf %164, %165 : vector<16x1xf32>
    %167 = arith.mulf %161, %161 : vector<16x1xf32>
    %168 = arith.subf %166, %167 : vector<16x1xf32>
    %169 = vector.broadcast %161 : vector<16x1xf32> to vector<16x32xf32>
    %170 = arith.subf %157, %169 : vector<16x32xf32>
    %cst_44 = arith.constant 9.99999974E-6 : f32
    %171 = vector.broadcast %cst_44 : f32 to vector<16x1xf32>
    %172 = arith.addf %168, %171 : vector<16x1xf32>
    %173 = math.rsqrt %172 : vector<16x1xf32>
    %174 = vector.broadcast %173 : vector<16x1xf32> to vector<16x32xf32>
    %175 = arith.mulf %170, %174 : vector<16x32xf32>
    %c9 = arith.constant 9 : index
    %c0_45 = arith.constant 0 : index
    %176 = vector.load %arg4[%c9, %c0_45] : memref<16x128xf32, #tpu.memory_space<vmem>>, vector<1x32xf32>
    %177 = vector.broadcast %176 : vector<1x32xf32> to vector<16x32xf32>
    %178 = arith.mulf %175, %177 : vector<16x32xf32>
    %c10 = arith.constant 10 : index
    %c0_46 = arith.constant 0 : index
    %179 = vector.load %arg4[%c10, %c0_46] : memref<16x128xf32, #tpu.memory_space<vmem>>, vector<1x32xf32>
    %180 = vector.broadcast %179 : vector<1x32xf32> to vector<16x32xf32>
    %181 = arith.addf %178, %180 : vector<16x32xf32>
    %182 = arith.truncf %181 : vector<16x32xf32> to vector<16x32xbf16>
    %c176 = arith.constant 176 : index
    %c0_47 = arith.constant 0 : index
    %183 = vector.load %arg3[%c176, %c0_47] : memref<272x128xbf16, #tpu.memory_space<vmem>>, vector<32x64xbf16>
    %cst_48 = arith.constant dense<0.000000e+00> : vector<16x64xf32>
    %184 = tpu.matmul %182, %183, %cst_48 {dimension_numbers = #tpu.dot_dimension_numbers<[1], [0], [0], [1], [0, 0, 1, 1], [], []>} : vector<16x32xbf16>, vector<32x64xbf16>, vector<16x64xf32> -> vector<16x64xf32>
    %c5 = arith.constant 5 : index
    %c0_49 = arith.constant 0 : index
    %185 = vector.load %arg4[%c5, %c0_49] : memref<16x128xf32, #tpu.memory_space<vmem>>, vector<1x64xf32>
    %186 = vector.broadcast %185 : vector<1x64xf32> to vector<16x64xf32>
    %187 = arith.addf %184, %186 : vector<16x64xf32>
    %cst_50 = arith.constant 0.000000e+00 : f32
    %188 = vector.broadcast %cst_50 : f32 to vector<16x64xf32>
    %189 = arith.maximumf %187, %188 : vector<16x64xf32>
    %190 = arith.truncf %189 : vector<16x64xf32> to vector<16x64xbf16>
    %c208 = arith.constant 208 : index
    %c0_51 = arith.constant 0 : index
    %191 = vector.load %arg3[%c208, %c0_51] : memref<272x128xbf16, #tpu.memory_space<vmem>>, vector<64x32xbf16>
    %cst_52 = arith.constant dense<0.000000e+00> : vector<16x32xf32>
    %192 = tpu.matmul %190, %191, %cst_52 {dimension_numbers = #tpu.dot_dimension_numbers<[1], [0], [0], [1], [0, 0, 1, 1], [], []>} : vector<16x64xbf16>, vector<64x32xbf16>, vector<16x32xf32> -> vector<16x32xf32>
    %c6 = arith.constant 6 : index
    %c0_53 = arith.constant 0 : index
    %193 = vector.load %arg4[%c6, %c0_53] : memref<16x128xf32, #tpu.memory_space<vmem>>, vector<1x32xf32>
    %194 = vector.broadcast %193 : vector<1x32xf32> to vector<16x32xf32>
    %195 = arith.addf %192, %194 : vector<16x32xf32>
    %196 = arith.addf %195, %181 : vector<16x32xf32>
    %cst_54 = arith.constant dense<0.000000e+00> : vector<16xf32>
    %197 = vector.multi_reduction <add>, %196, %cst_54 [1] : vector<16x32xf32> to vector<16xf32>
    %198 = vector.shape_cast %197 : vector<16xf32> to vector<16x1xf32>
    %cst_55 = arith.constant 3.200000e+01 : f32
    %199 = vector.broadcast %cst_55 : f32 to vector<16x1xf32>
    %200 = arith.divf %198, %199 : vector<16x1xf32>
    %201 = arith.mulf %196, %196 : vector<16x32xf32>
    %cst_56 = arith.constant dense<0.000000e+00> : vector<16xf32>
    %202 = vector.multi_reduction <add>, %201, %cst_56 [1] : vector<16x32xf32> to vector<16xf32>
    %203 = vector.shape_cast %202 : vector<16xf32> to vector<16x1xf32>
    %cst_57 = arith.constant 3.200000e+01 : f32
    %204 = vector.broadcast %cst_57 : f32 to vector<16x1xf32>
    %205 = arith.divf %203, %204 : vector<16x1xf32>
    %206 = arith.mulf %200, %200 : vector<16x1xf32>
    %207 = arith.subf %205, %206 : vector<16x1xf32>
    %208 = vector.broadcast %200 : vector<16x1xf32> to vector<16x32xf32>
    %209 = arith.subf %196, %208 : vector<16x32xf32>
    %cst_58 = arith.constant 9.99999974E-6 : f32
    %210 = vector.broadcast %cst_58 : f32 to vector<16x1xf32>
    %211 = arith.addf %207, %210 : vector<16x1xf32>
    %212 = math.rsqrt %211 : vector<16x1xf32>
    %213 = vector.broadcast %212 : vector<16x1xf32> to vector<16x32xf32>
    %214 = arith.mulf %209, %213 : vector<16x32xf32>
    %c11 = arith.constant 11 : index
    %c0_59 = arith.constant 0 : index
    %215 = vector.load %arg4[%c11, %c0_59] : memref<16x128xf32, #tpu.memory_space<vmem>>, vector<1x32xf32>
    %216 = vector.broadcast %215 : vector<1x32xf32> to vector<16x32xf32>
    %217 = arith.mulf %214, %216 : vector<16x32xf32>
    %c12 = arith.constant 12 : index
    %c0_60 = arith.constant 0 : index
    %218 = vector.load %arg4[%c12, %c0_60] : memref<16x128xf32, #tpu.memory_space<vmem>>, vector<1x32xf32>
    %219 = vector.broadcast %218 : vector<1x32xf32> to vector<16x32xf32>
    %220 = arith.addf %217, %219 : vector<16x32xf32>
    %221 = vector.shape_cast %220 : vector<16x32xf32> to vector<2x8x32xf32>
    %c0_61 = arith.constant 0 : index
    %c0_62 = arith.constant 0 : index
    %c0_63 = arith.constant 0 : index
    %222 = vector.load %arg5[%c0_61, %c0_62, %c0_63] : memref<2x8x32xf32, #tpu.memory_space<vmem>>, vector<2x8x32xf32>
    tpu.vector_store %arg5[%c0_61, %c0_62, %c0_63], %221 {strides = array<i32>} : memref<2x8x32xf32, #tpu.memory_space<vmem>>, vector<2x8x32xf32>,
    return
  }
  func.func @transform_0(%arg0: i32) -> (i32, i32, i32) {
    %c0_i32 = arith.constant 0 : i32
    %c0_i32_0 = arith.constant 0 : i32
    %c0_i32_1 = arith.constant 0 : i32
    return %arg0, %c0_i32, %c0_i32_0 : i32, i32, i32
  }
  func.func @transform_1(%arg0: i32) -> (i32, i32, i32) {
    %c0_i32 = arith.constant 0 : i32
    %c0_i32_0 = arith.constant 0 : i32
    %c0_i32_1 = arith.constant 0 : i32
    return %arg0, %c0_i32, %c0_i32_0 : i32, i32, i32
  }
  func.func @transform_2(%arg0: i32) -> (i32, i32) {
    %c0_i32 = arith.constant 0 : i32
    %c0_i32_0 = arith.constant 0 : i32
    %c0_i32_1 = arith.constant 0 : i32
    return %c0_i32, %c0_i32_0 : i32, i32
  }
  func.func @transform_3(%arg0: i32) -> (i32, i32) {
    %c0_i32 = arith.constant 0 : i32
    %c0_i32_0 = arith.constant 0 : i32
    %c0_i32_1 = arith.constant 0 : i32
    return %c0_i32, %c0_i32_0 : i32, i32
  }
  func.func @transform_4(%arg0: i32) -> (i32, i32, i32) {
    %c0_i32 = arith.constant 0 : i32
    %c0_i32_0 = arith.constant 0 : i32
    %c0_i32_1 = arith.constant 0 : i32
    return %arg0, %c0_i32, %c0_i32_0 : i32, i32, i32
  }
}

</mosaic_0001>

<bundles_post_ra>
// kernel: tpu_custom_call.1
= control target key start
LH: loop header
LB: loop body
LE: loop exit
PB: predicated region body
PF: predicated region fallthrough
CT: control target
= control target key end

     0   :  { %9 = vsyncpa [#allocation3], 0  ;;  %s2729_s0 = inlined_call_operand.vmem [shape: f32[2,10,48], index: 0, kind: input, shape index: {}]   ;;  %s2730_s1 = inlined_call_operand.vmem [shape: f32[2,8,32], index: 1, kind: input, shape index: {}]   ;;  %s2731_s2 = inlined_call_operand.hbm [shape: bf16[272,128], index: 2, kind: input, shape index: {}]   ;;  %s2732_s3 = inlined_call_operand.vmem [shape: f32[16,128], index: 3, kind: input, shape index: {}]   ;;  %s2733_s4 = inlined_call_operand.hbm [shape: f32[2,8,32], index: 4, kind: output, shape index: {}]  }
   0x1   :  { %10 = vsyncpa [#allocation4], 0  ;;  %s2343_s15 = smov [#allocation2]   ;;  %s2295_s19 = scalar_lea.hbm %s2731_s2, 2176 }
   0x2   :  { %s20_s16 = sshll.u32 %s2343_s15, 4  ;;  %p2296_p0 = scmp.ne.s32.totalorder %s2731_s2, %s2295_s19  ;;  %s21_s16 = int_to_ptr.vmem [resolvable:$true] %s20_s16 }
   0x3   :  { %p2299_p1 = scmp.lt.u32.totalorder %s2295_s19, %s2731_s2 }
   0x5   :  { %p2301_p2 = pnand %p2299_p1, %p2296_p0 }
   0x7   :  { %2304 = shalt.err (!%p2301_p2)
}
   0x8   :  { %s2305_s24 = scalar_lea.vmem %s21_s16, 2176  ;;  %p2310_p4 = scmp.lt.s32.totalorder %s21_s16, %s21_s16 }
   0x9   :  { %p2306_p3 = scmp.ne.s32.totalorder %s21_s16, %s2305_s24  ;;  %p2311_p5 = scmp.lt.s32.totalorder %s2305_s24, %s2305_s24 }
   0xb   :  { %p2312_p6 = por %p2311_p5, %p2310_p4 }
   0xd   :  { %p2313_p7 = pnand %p2312_p6, %p2306_p3 }
   0xf   :  { %2316 = shalt.err (!%p2313_p7)
}
  0x10   :  { %s2344_s25 = smov 64   ;;  %s2345_s26 = smov 4  }
  0x11   :  { %26 = dma.hbm_to_vmem [thread:$0]  %s2731_s2, 2176, %s21_s16, [#allocation3], %s2344_s25, %s2344_s25, %s2345_s26  }
  0x12   :  { %2339 = dma.done.wait [#allocation3], 2176  }
  0x13   :  { %2340 = vsyncadd [#allocation3], 4294965120  ;;  %v2346_v0 = vmov 0.0   ;;  %vm2347_vm0 = vmmov 0   ;;  %v2232_v1 = vld [vmem:[#allocation2] sm:$0xff]   ;;  %v2233_v2 = vld [vmem:[#allocation2 + $0x8] sm:$0xff]   ;;  %v33_v29 = vlaneseq }
  0x14   :  { %2041 = vmatprep.subr.bf16.mxu1 %v2346_v0  ;;  %2045 = vmatprep.mubr.msk.bf16.mxu1 %vm2347_vm0, %v2346_v0  ;;  %v2404_v3 = vld [vmem:[%s2730_s1] sm:$0xff]  ;;  %v2409_v4 = vld [vmem:[%s2730_s1 + $0x8] sm:$0xff]  ;;  %vm119_vm1 = vcmask 261120   ;;  %s2348_s1 = smov 112   ;;  %s2349_s8 = smov 96   ;;  %vm179_vm2 = vcmask 130048  }
  0x15   :  { %2055 = vmatprep.subr.bf16.mxu0 %v2346_v0  ;;  %2057 = vmatprep.mubr.msk.bf16.mxu0 %vm2347_vm0, %v2346_v0  ;;  %v97_v5 = vpack.c.bf16 %v2409_v4, %v2404_v3  ;;  %v1930_v6 = vld [vmem:[%s2732_s3] ss:$0 sm:$0xff]  ;;  %v2462_v30 = vshrl.u32 %v33_v29, 7  ;;  %v36_v31 = vand.u32 127, %v33_v29  ;;  %v2350_v33 = vmov -1e+30  }
  0x16   :  { %2042 = vmatpush3.bf16.msra.mxu1 %v2232_v1  ;;  %vm381_vm4 = vcmask 64512   ;;  %vm435_vm5 = vcmask 1043456   ;;  %s2351_s9 = smov 16   ;;  %vm888_vm6 = vcmask 392192   ;;  %vm1344_vm7 = vcmask 80896   ;;  %s2353_s13 = smov [#allocation5]  }
  0x17   :  { %2043 = vmatprep.subr.bf16.mxu1 %v2346_v0  ;;  %vm37_vm3 = vcmp.le.s32.totalorder %v36_v31, %v2462_v30  ;;  %vm1399_vm8 = vcmask 1044480   ;;  %vm1818_vm9 = vcmask 523264   ;;  %s1916_s14 = sshll.u32 %s2353_s13, 4  ;;  %s1917_s14 = int_to_ptr.vmem [resolvable:$true] %s1916_s14 }
  0x18   :  { %v38_v34 = vsel %vm37_vm3, 0.0, %v2350_v33  ;;  %s2317_s15 = scalar_lea.vmem %s1917_s14, 256  ;;  %p2322_p9 = scmp.lt.s32.totalorder %s1917_s14, %s1917_s14 }
  0x19   :  { %p2318_p8 = scmp.ne.s32.totalorder %s1917_s14, %s2317_s15  ;;  %p2323_p10 = scmp.lt.s32.totalorder %s2317_s15, %s2317_s15 }
  0x1a   :  { %2044 = vmatpush3.bf16.msra.mxu1 %v2233_v2 }
  0x1b   :  { %2049 = vmatprep.subr.bf16.mxu1 %v2346_v0  ;;  %p2324_p11 = por %p2323_p10, %p2322_p9 }
  0x1d   :  { %2046 = vmatmul.mubr.msk.bf16.vlgmr.msra.gmra.mrb[0].mxu1 %vm119_vm1, %v97_v5  ;;  %p2325_p12 = pnand %p2324_p11, %p2318_p8 }
  0x1e   :  { %2051 = vmatprep.mubr.msk.bf16.mxu1 %vm2347_vm0, %v2346_v0 }
  0xf0   :  { %v157_v7 = vpop.f32.mrb[0].mxu1 }
  0xf1   :  { %v2047_v8 = vpop.f32.mrb[1].mxu1  ;;  %v158_v10 = vadd.f32 %v1930_v6, %v157_v7 }
  0xf2   :  { %v160_v9 = vpop.f32.mrb[2].mxu1 }
  0xf3   :  { %v161_v11 = vadd.f32 %v1930_v6, %v160_v9  ;;  %v2048_v12 = vpop.f32.mrb[3].mxu1  ;;  %v2426_v15 = vpack.c.bf16 %v158_v10, %v158_v10 }
  0xf5   :  { %v2421_v13 = vpack.c.bf16 %v161_v11, %v161_v11  ;;  %v2212_v14 = vpack.i.bf16 %v161_v11, %v158_v10 }
  0xf7   :  { %2213 = vrot.lane.b32.xlu0 %v2212_v14, %s2348_s1  ;;  %227 = vrot.lane.b32.xlu1 %v2421_v13, %s2349_s8 }
  0xfb   :  { %177 = vrot.lane.b32.xlu0 %v2426_v15, %s2349_s8 }
 0x169   :  { %v2214_v16 = vpop.permute.xlu0 %2213  ;;  %v228_v17 = vpop.permute.xlu1 %227 }
 0x16a   :  { %v2216_v18 = vunpack.i.h.bf16 %v2214_v16  ;;  %v2215_v19 = vunpack.i.l.bf16 %v2214_v16  ;;  %v233_v20 = vsel %vm179_vm2, %v228_v17, 0 }
 0x16b   :  { %2056 = vmatpush3.bf16.xpose.msra.mxu0 %v233_v20 }
 0x16c   :  { %v2431_v21 = vpack.c.bf16 %v2216_v18, %v2216_v18  ;;  %v2433_v22 = vpack.c.bf16 %v2215_v19, %v2215_v19  ;;  %2067 = vmatprep.subr.bf16.mxu0 %v2346_v0 }
 0x16d   :  { %v178_v23 = vpop.permute.xlu0 %177 }
 0x16e   :  { %v184_v24 = vsel %vm179_vm2, %v178_v23, 0  ;;  %325 = vrot.lane.b32.xlu0 %v2431_v21, %s2349_s8  ;;  %276 = vrot.lane.b32.xlu1 %v2433_v22, %s2349_s8 }
 0x16f   :  { %2050 = vmatpush3.bf16.xpose.msra.mxu1 %v184_v24 }
 0x170   :  { %2061 = vmatprep.subr.bf16.mxu1 %v2346_v0 }
 0x172   :  { %2058 = vmatmul.mubr.msk.bf16.vlgmr.msra.gmra.mrb[0].mxu0 %vm179_vm2, %v2421_v13 }
 0x173   :  { %2069 = vmatprep.mubr.msk.bf16.mxu0 %vm2347_vm0, %v2346_v0 }
 0x176   :  { %2052 = vmatmul.mubr.msk.bf16.vlgmr.msra.gmra.mrb[4].mxu1 %vm179_vm2, %v2426_v15 }
 0x177   :  { %2063 = vmatprep.mubr.msk.bf16.mxu1 %vm2347_vm0, %v2346_v0 }
 0x1e0   :  { %v326_v25 = vpop.permute.xlu0 %325  ;;  %v277_v26 = vpop.permute.xlu1 %276 }
 0x1e1   :  { %v331_v27 = vsel %vm179_vm2, %v326_v25, 0  ;;  %v282_v28 = vsel %vm179_vm2, %v277_v26, 0 }
 0x1e2   :  { %2062 = vmatpush3.bf16.xpose.msra.mxu1 %v282_v28  ;;  %2068 = vmatpush3.bf16.xpose.msra.mxu0 %v331_v27 }
 0x1e3   :  { %2073 = vmatprep.subr.bf16.mxu1 %v2346_v0  ;;  %2079 = vmatprep.subr.bf16.mxu0 %v2346_v0 }
 0x1e9   :  { %2064 = vmatmul.mubr.msk.bf16.vlgmr.msra.gmra.mrb[8].mxu1 %vm179_vm2, %v2433_v22  ;;  %2070 = vmatmul.mubr.msk.bf16.vlgmr.msra.gmra.mrb[4].mxu0 %vm179_vm2, %v2431_v21 }
 0x1ea   :  { %2075 = vmatprep.mubr.msk.bf16.mxu1 %vm2347_vm0, %v2346_v0  ;;  %2081 = vmatprep.mubr.msk.bf16.mxu0 %vm2347_vm0, %v2346_v0 }
 0x245   :  { %v269_v32 = vpop.f32.mrb[0].mxu0 }
 0x246   :  { %v374_v35 = vmul.f32 0.25, %v269_v32  ;;  %v2059_v36 = vpop.f32.mrb[1].mxu0 }
 0x247   :  { %v272_v37 = vpop.f32.mrb[2].mxu0 }
 0x248   :  { %v2060_v38 = vpop.f32.mrb[3].mxu0  ;;  %v378_v39 = vadd.f32 %v374_v35, %v38_v34 }
 0x249   :  { %v220_v40 = vpop.f32.mrb[4].mxu1 }
 0x24a   :  { %v373_v41 = vmul.f32 0.25, %v220_v40  ;;  %v2053_v42 = vpop.f32.mrb[5].mxu1  ;;  %v385_v43 = vsel %vm381_vm4, %v378_v39, -inf }
 0x24b   :  { %386 = vmax.xlane.f32.xlu0 %v385_v43  ;;  %v223_v44 = vpop.f32.mrb[6].mxu1 }
 0x24c   :  { %v2054_v45 = vpop.f32.mrb[7].mxu1  ;;  %v377_v46 = vadd.f32 %v373_v41, %v38_v34 }
 0x24e   :  { %v382_v47 = vsel %vm381_vm4, %v377_v46, -inf }
 0x24f   :  { %383 = vmax.xlane.f32.xlu1 %v382_v47 }
 0x2bc   :  { %v318_v48 = vpop.f32.mrb[8].mxu1  ;;  %v367_v49 = vpop.f32.mrb[4].mxu0 }
 0x2bd   :  { %v375_v50 = vmul.f32 0.25, %v318_v48  ;;  %v376_v51 = vmul.f32 0.25, %v367_v49  ;;  %v2065_v52 = vpop.f32.mrb[9].mxu1  ;;  %v2071_v53 = vpop.f32.mrb[5].mxu0 }
 0x2be   :  { %v321_v54 = vpop.f32.mrb[10].mxu1  ;;  %v370_v55 = vpop.f32.mrb[6].mxu0 }
 0x2bf   :  { %v2066_v56 = vpop.f32.mrb[11].mxu1  ;;  %v2072_v57 = vpop.f32.mrb[7].mxu0  ;;  %v380_v58 = vadd.f32 %v376_v51, %v38_v34  ;;  %v379_v59 = vadd.f32 %v375_v50, %v38_v34  ;;  %v2235_v55 = vld [vmem:[#allocation2 + $0x18] sm:$0xff]  }
 0x2c1   :  { %v391_v60 = vsel %vm381_vm4, %v380_v58, -inf  ;;  %v388_v61 = vsel %vm381_vm4, %v379_v59, -inf }
 0x2c2   :  { %392 = vmax.xlane.f32.xlu1 %v391_v60  ;;  %389 = vmax.xlane.f32.xlu0 %v388_v61 }
 0x2d3   :  { %479 = vrot.lane.b32.xlu1 %v2421_v13, %s2344_s25 }
 0x2d8   :  { %430 = vrot.lane.b32.xlu0 %v2426_v15, %s2344_s25  ;;  %v387_v62 = vpop.xlane.xlu0 %386 }
 0x2d9   :  { %v395_v1 = vsub.f32 %v378_v39, %v387_v62 }
 0x2db   :  { %v400_v5 = vmul.f32 1.442695, %v395_v1 }
 0x2dc   :  { %v384_v63 = vpop.xlane.xlu1 %383 }
 0x2dd   :  { %v394_v2 = vsub.f32 %v377_v46, %v384_v63  ;;  %2251 = vpow2.f32 %v400_v5  ;;  %v2234_v46 = vld [vmem:[#allocation2 + $0x10] sm:$0xff]  }
 0x2df   :  { %v398_v6 = vmul.f32 1.442695, %v394_v2 }
 0x2e1   :  { %2253 = vpow2.f32 %v398_v6 }
 0x2e7   :  { %v2252_v7 = vpop.eup %2251 }
 0x2e8   :  { %v409_v9 = vsel %vm381_vm4, %v2252_v7, 0.0 }
 0x2eb   :  { %v2254_v8 = vpop.eup %2253 }
 0x2ec   :  { %v406_v10 = vsel %vm381_vm4, %v2254_v8, 0.0 }
 0x2f7   :  { %410 = vadd.xlane.f32.xlu1 %v409_v9  ;;  %407 = vadd.xlane.f32.xlu0 %v406_v10  ;;  %v2236_v10 = vld [vmem:[#allocation2 + $0x30] sm:$0xff]  }
 0x34f   :  { %v393_v11 = vpop.xlane.xlu1 %392  ;;  %v390_v12 = vpop.xlane.xlu0 %389 }
 0x350   :  { %v397_v13 = vsub.f32 %v380_v58, %v393_v11  ;;  %v396_v14 = vsub.f32 %v379_v59, %v390_v12  ;;  %v1942_v11 = vld [vmem:[%s2732_s3 + $0x1] ss:$0 sm:$0xff] }
 0x352   :  { %v404_v15 = vmul.f32 1.442695, %v397_v13  ;;  %v402_v16 = vmul.f32 1.442695, %v396_v14 }
 0x353   :  { %v480_v17 = vpop.permute.xlu1 %479  ;;  %v431_v18 = vpop.permute.xlu0 %430 }
 0x354   :  { %2255 = vpow2.f32 %v404_v15  ;;  %v485_v19 = vsel %vm435_vm5, %v480_v17, 0  ;;  %v437_v20 = vsel %vm435_vm5, %v431_v18, 0 }
 0x355   :  { %2257 = vpow2.f32 %v402_v16  ;;  %2074 = vmatpush3.bf16.msra.mxu1 %v437_v20  ;;  %2080 = vmatpush3.bf16.msra.mxu0 %v485_v19  ;;  %v2352_v19 = vmov 1983009808  }
 0x356   :  { %2085 = vmatprep.subr.bf16.mxu1 %v2346_v0  ;;  %2091 = vmatprep.subr.bf16.mxu0 %v2346_v0  ;;  %v51_v20 = vunpack.c.l.s4 %v2352_v19 }
 0x35e   :  { %v2256_v23 = vpop.eup %2255 }
 0x35f   :  { %v2258_v24 = vpop.eup %2257  ;;  %v415_v25 = vsel %vm381_vm4, %v2256_v23, 0.0 }
 0x360   :  { %416 = vadd.xlane.f32.xlu1 %v415_v25  ;;  %v412_v26 = vsel %vm381_vm4, %v2258_v24, 0.0 }
 0x361   :  { %413 = vadd.xlane.f32.xlu0 %v412_v26 }
 0x371   :  { %527 = vrot.lane.b32.xlu1 %v2433_v22, %s2344_s25 }
 0x377   :  { %575 = vrot.lane.b32.xlu0 %v2431_v21, %s2344_s25 }
 0x384   :  { %v411_v27 = vpop.xlane.xlu1 %410  ;;  %v408_v28 = vpop.xlane.xlu0 %407 }
 0x385   :  { %2259 = vrcp.f32 %v411_v27  ;;  %v52_v27 = vunpack.c.0.s8 %v51_v20 }
 0x386   :  { %2261 = vrcp.f32 %v408_v28 }
 0x38f   :  { %v2260_v29 = vpop.eup %2259 }
 0x390   :  { %v2262_v31 = vpop.eup %2261  ;;  %v423_v32 = vmul.f32 %v2260_v29, %v2252_v7 }
 0x391   :  { %v422_v33 = vmul.f32 %v2262_v31, %v2254_v8  ;;  %v41_v31 = vld [vmem:[%s2729_s0] sm:$0xff] }
 0x392   :  { %v427_v34 = vpack.c.bf16 %v423_v32, %v423_v32  ;;  %v49_v32 = vcombine.high %v41_v31, %v41_v31 }
 0x393   :  { %v426_v35 = vpack.c.bf16 %v422_v33, %v422_v33  ;;  %v43_v33 = vld [vmem:[%s2729_s0 + $0x10] sm:$0xff] }
 0x394   :  { %2082 = vmatmul.mubr.msk.bf16.vlgmr.msra.gmra.mrb[8].mxu0 %vm381_vm4, %v427_v34 }
 0x395   :  { %2076 = vmatmul.mubr.msk.bf16.vlgmr.msra.gmra.mrb[12].mxu1 %vm381_vm4, %v426_v35  ;;  %2093 = vmatprep.mubr.msk.bf16.mxu0 %vm2347_vm0, %v2346_v0 }
 0x396   :  { %2087 = vmatprep.mubr.msk.bf16.mxu1 %vm2347_vm0, %v2346_v0 }
 0x3ed   :  { %v417_v21 = vpop.xlane.xlu1 %416 }
 0x3ee   :  { %2263 = vrcp.f32 %v417_v21  ;;  %v414_v22 = vpop.xlane.xlu0 %413  ;;  %v73_v21 = vcombine.high %v43_v33, %v43_v33 }
 0x3ef   :  { %2265 = vrcp.f32 %v414_v22 }
 0x3f1   :  { %v528_v36 = vpop.permute.xlu1 %527 }
 0x3f2   :  { %v533_v37 = vsel %vm435_vm5, %v528_v36, 0  ;;  %v576_v38 = vpop.permute.xlu0 %575 }
 0x3f3   :  { %v581_v39 = vsel %vm435_vm5, %v576_v38, 0  ;;  %2086 = vmatpush3.bf16.msra.mxu1 %v533_v37 }
 0x3f4   :  { %2092 = vmatpush3.bf16.msra.mxu0 %v581_v39  ;;  %2097 = vmatprep.subr.bf16.mxu1 %v2346_v0  ;;  %v2237_v39 = vld [vmem:[#allocation2 + $0x38] sm:$0xff]  }
 0x3f5   :  { %2105 = vmatprep.subr.bf16.mxu0 %v2346_v0 }
 0x3f8   :  { %v2264_v40 = vpop.eup %2263 }
 0x3f9   :  { %v2266_v41 = vpop.eup %2265  ;;  %v425_v42 = vmul.f32 %v2264_v40, %v2256_v23  ;;  %v1928_v40 = vld.sshfl [vmem:[%s2729_s0 + $0x8] sm:$0x3 pattern:$0x76325410] }
 0x3fa   :  { %v424_v43 = vmul.f32 %v2266_v41, %v2258_v24 }
 0x3fb   :  { %v429_v44 = vpack.c.bf16 %v425_v42, %v425_v42 }
 0x3fc   :  { %v428_v45 = vpack.c.bf16 %v424_v43, %v424_v43 }
 0x3fd   :  { %2094 = vmatmul.mubr.msk.bf16.vlgmr.msra.gmra.mrb[12].mxu0 %vm381_vm4, %v429_v44 }
 0x3fe   :  { %2088 = vmatmul.mubr.msk.bf16.vlgmr.msra.gmra.mrb[16].mxu1 %vm381_vm4, %v428_v45  ;;  %2109 = vmatprep.mubr.msk.bf16.mxu0 %vm2347_vm0, %v2346_v0 }
 0x3ff   :  { %2101 = vmatprep.mubr.msk.bf16.mxu1 %vm2347_vm0, %v2346_v0  ;;  %2098 = vmatpush3.bf16.msra.mxu1 %v2234_v46 }
 0x400   :  { %2099 = vmatprep.subr.bf16.mxu1 %v2346_v0 }
 0x403   :  { %2100 = vmatpush3.bf16.msra.mxu1 %v2235_v55 }
 0x404   :  { %2113 = vmatprep.subr.bf16.mxu1 %v2236_v10 }
 0x467   :  { %v521_v47 = vpop.f32.mrb[8].mxu0 }
 0x468   :  { %v473_v48 = vpop.f32.mrb[12].mxu1  ;;  %v2083_v49 = vpop.f32.mrb[9].mxu0 }
 0x469   :  { %v2077_v50 = vpop.f32.mrb[13].mxu1  ;;  %v524_v51 = vpop.f32.mrb[10].mxu0 }
 0x46a   :  { %v476_v52 = vpop.f32.mrb[14].mxu1  ;;  %v2084_v53 = vpop.f32.mrb[11].mxu0  ;;  %v1929_v50 = vld.sshfl [vmem:[%s2729_s0 + $0x18] sm:$0x3 pattern:$0x76325410] }
 0x46b   :  { %v2078_v54 = vpop.f32.mrb[15].mxu1  ;;  %v2238_v51 = vld [vmem:[#allocation2 + $0x40] sm:$0xff]  }
 0x4d0   :  { %v617_v56 = vpop.f32.mrb[12].mxu0 }
 0x4d1   :  { %v569_v57 = vpop.f32.mrb[16].mxu1  ;;  %v2095_v58 = vpop.f32.mrb[13].mxu0 }
 0x4d2   :  { %v2217_v59 = vpack.i.bf16 %v617_v56, %v569_v57  ;;  %v2089_v60 = vpop.f32.mrb[17].mxu1  ;;  %v620_v61 = vpop.f32.mrb[14].mxu0  ;;  %v2241_v58 = vld [vmem:[#allocation2 + $0x20] sm:$0xff]  }
 0x4d3   :  { %v572_v62 = vpop.f32.mrb[18].mxu1  ;;  %v2096_v63 = vpop.f32.mrb[15].mxu0  ;;  %2106 = vmatpush3.bf16.msra.mxu0 %v2241_v58 }
 0x4d4   :  { %2218 = vrot.lane.b32.xlu1 %v2217_v59, %s2351_s9  ;;  %v2090_v1 = vpop.f32.mrb[19].mxu1  ;;  %v2242_v59 = vld [vmem:[#allocation2 + $0x28] sm:$0xff]   ;;  %2107 = vmatprep.subr.bf16.mxu0 %v2346_v0 }
 0x4d7   :  { %2108 = vmatpush3.bf16.msra.mxu0 %v2242_v59 }
 0x4d8   :  { %2123 = vmatprep.subr.bf16.mxu0 %v2346_v0 }
 0x546   :  { %v2219_v2 = vpop.permute.xlu1 %2218 }
 0x547   :  { %v2221_v5 = vunpack.i.h.bf16 %v2219_v2  ;;  %v2220_v6 = vunpack.i.l.bf16 %v2219_v2 }
 0x549   :  { %v632_v7 = vsel %vm179_vm2, %v521_v47, %v2221_v5  ;;  %v631_v8 = vsel %vm179_vm2, %v473_v48, %v2220_v6 }
 0x54a   :  { %v633_v9 = vpack.c.bf16 %v632_v7, %v631_v8 }
 0x54c   :  { %2102 = vmatmul.mubr.msk.bf16.vlgmr.msra.gmra.mrb[20].mxu1 %vm119_vm1, %v633_v9 }
 0x54d   :  { %2114 = vmatpush3.bf16.msra.mxu1 %v2236_v10 }
 0x54e   :  { %2115 = vmatprep.subr.bf16.mxu1 %v2237_v39 }
 0x551   :  { %2116 = vmatpush3.bf16.msra.mxu1 %v2237_v39 }
 0x552   :  { %2117 = vmatprep.subr.bf16.mxu1 %v2238_v51 }
 0x555   :  { %2118 = vmatpush3.bf16.msra.mxu1 %v2238_v51 }
 0x556   :  { %2129 = vmatprep.subr.bf16.mxu1 %v2346_v0 }
 0x61f   :  { %v692_v12 = vpop.f32.mrb[20].mxu1 }
 0x620   :  { %v693_v13 = vadd.f32 %v1942_v11, %v692_v12  ;;  %v2103_v14 = vpop.f32.mrb[21].mxu1 }
 0x621   :  { %v695_v15 = vpop.f32.mrb[22].mxu1 }
 0x622   :  { %v2510_v16 = vadd.f32 %v693_v13, %v2404_v3  ;;  %v696_v17 = vadd.f32 %v1942_v11, %v695_v15  ;;  %v2104_v18 = vpop.f32.mrb[23].mxu1 }
 0x624   :  { %v2513_v23 = vadd.f32 %v696_v17, %v2409_v4  ;;  %v701_v24 = vsel %vm119_vm1, %v2510_v16, 0.0  ;;  %v710_v25 = vmul.f32 %v2510_v16, %v2510_v16  ;;  %v2525_v4 = vsub.s32 %v52_v27, %v2462_v30  ;;  %v1946_v17 = vld [vmem:[%s2732_s3 + $0x7] ss:$0 sm:$0xff] }
 0x625   :  { %702 = vadd.xlane.f32.xlu0 %v701_v24 }
 0x626   :  { %v704_v26 = vsel %vm119_vm1, %v2513_v23, 0.0  ;;  %v712_v3 = vsel %vm119_vm1, %v710_v25, 0.0  ;;  %v711_v28 = vmul.f32 %v2513_v23, %v2513_v23  ;;  %v56_v34 = vrot.slane %v41_v31, %v2525_v4  ;;  %v1947_v25 = vld [vmem:[%s2732_s3 + $0x8] ss:$0 sm:$0xff] }
 0x627   :  { %705 = vadd.xlane.f32.xlu1 %v704_v26  ;;  %v63_v35 = vrot.slane %v49_v32, %v2525_v4  ;;  %v80_v30 = vrot.slane %v43_v33, %v2525_v4  ;;  %v87_v37 = vrot.slane %v73_v21, %v2525_v4 }
 0x628   :  { %v715_v29 = vsel %vm119_vm1, %v711_v28, 0.0  ;;  %v64_v22 = vcombine.high %v56_v34, %v56_v34 }
 0x629   :  { %713 = vadd.xlane.f32.xlu0 %v712_v3  ;;  %v65_v36 = vcombine.high %v63_v35, %v63_v35  ;;  %v88_v38 = vcombine.high %v80_v30, %v80_v30  ;;  %v829_v43 = vcombine.low %v1928_v40, %v80_v30  ;;  %v89_v45 = vcombine.high %v87_v37, %v87_v37 }
 0x62a   :  { %v812_v41 = vcombine.low %v56_v34, %v64_v22 }
 0x62b   :  { %v813_v42 = vcombine.low %v63_v35, %v65_v36  ;;  %v830_v44 = vcombine.low %v88_v38, %v87_v37  ;;  %v837_v48 = vrot.slane %v829_v43, %v2525_v4  ;;  %v846_v52 = vcombine.low %v89_v45, %v1929_v50 }
 0x62c   :  { %v820_v46 = vrot.slane %v812_v41, %v2525_v4 }
 0x62d   :  { %716 = vadd.xlane.f32.xlu0 %v715_v29  ;;  %v827_v47 = vrot.slane %v813_v42, %v2525_v4  ;;  %v844_v49 = vrot.slane %v830_v44, %v2525_v4  ;;  %v853_v55 = vrot.slane %v846_v52, %v2525_v4 }
 0x62f   :  { %v828_v53 = vcombine.low %v820_v46, %v827_v47  ;;  %v845_v54 = vcombine.low %v837_v48, %v844_v49  ;;  %v858_v57 = vpack.c.bf16 %v853_v55, %v853_v55 }
 0x631   :  { %v857_v56 = vpack.c.bf16 %v845_v54, %v828_v53 }
 0x633   :  { %2119 = vmatprep.mubr.msk.bf16.mxu1 %vm888_vm6, %v857_v56 }
 0x634   :  { %2120 = vmatmul.mubr.msk.bf16.vlgmr.msra.gmra.mrb[24].mxu1 %vm888_vm6, %v858_v57 }
 0x635   :  { %2131 = vmatprep.mubr.msk.bf16.mxu1 %vm2347_vm0, %v2346_v0 }
 0x6b2   :  { %v703_v60 = vpop.xlane.xlu0 %702 }
 0x6b3   :  { %v708_v61 = vmul.f32 0.03125, %v703_v60 }
 0x6b4   :  { %v706_v62 = vpop.xlane.xlu1 %705 }
 0x6b5   :  { %v720_v1 = vmul.f32 %v708_v61, %v708_v61  ;;  %v709_v2 = vmul.f32 0.03125, %v706_v62  ;;  %v724_v13 = vsub.f32 %v2510_v16, %v708_v61 }
 0x6b6   :  { %v714_v63 = vpop.xlane.xlu0 %713 }
 0x6b7   :  { %v718_v5 = vmul.f32 0.03125, %v714_v63  ;;  %v721_v8 = vmul.f32 %v709_v2, %v709_v2  ;;  %v725_v18 = vsub.f32 %v2513_v23, %v709_v2  ;;  %v1952_v23 = vld [vmem:[%s2732_s3 + $0x3] ss:$0 sm:$0xff] }
 0x6b9   :  { %v722_v6 = vsub.f32 %v718_v5, %v720_v1 }
 0x6ba   :  { %v717_v7 = vpop.xlane.xlu0 %716 }
 0x6bb   :  { %v726_v9 = vadd.f32 1e-05, %v722_v6  ;;  %v719_v10 = vmul.f32 0.03125, %v717_v7 }
 0x6bd   :  { %2267 = vrsqrt.f32 %v726_v9  ;;  %v723_v11 = vsub.f32 %v719_v10, %v721_v8 }
 0x6bf   :  { %v727_v12 = vadd.f32 1e-05, %v723_v11 }
 0x6c1   :  { %2269 = vrsqrt.f32 %v727_v12 }
 0x6c7   :  { %v2268_v14 = vpop.eup %2267 }
 0x6c8   :  { %v730_v15 = vmul.f32 %v2268_v14, %v724_v13 }
 0x6ca   :  { %v737_v24 = vmul.f32 %v1946_v17, %v730_v15 }
 0x6cb   :  { %v2270_v19 = vpop.eup %2269 }
 0x6cc   :  { %v731_v20 = vmul.f32 %v2270_v19, %v725_v18  ;;  %v2562_v27 = vadd.f32 %v1947_v25, %v737_v24 }
 0x6ce   :  { %v738_v26 = vmul.f32 %v1946_v17, %v731_v20 }
 0x6d0   :  { %v2564_v3 = vadd.f32 %v1947_v25, %v738_v26 }
 0x6d2   :  { %v746_v16 = vpack.c.bf16 %v2564_v3, %v2562_v27 }
 0x6d4   :  { %2110 = vmatmul.mubr.msk.bf16.vlgmr.msra.gmra.mrb[16].mxu0 %vm119_vm1, %v746_v16 }
 0x6d5   :  { %2125 = vmatprep.mubr.msk.bf16.mxu0 %vm2347_vm0, %v2346_v0 }
 0x707   :  { %v2121_v28 = vpop.f32.mrb[24].mxu1 }
 0x708   :  { %v929_v29 = vpop.f32.mrb[25].mxu1  ;;  %v938_v33 = vadd.f32 %v2121_v28, %v1952_v23 }
 0x709   :  { %v930_v31 = vadd.f32 %v1952_v23, %v929_v29  ;;  %v2122_v32 = vpop.f32.mrb[26].mxu1 }
 0x70a   :  { %v932_v34 = vpop.f32.mrb[27].mxu1  ;;  %v1004_v39 = vrot.slane %v938_v33, %v2525_v4 }
 0x70b   :  { %v964_v35 = vcombine.high %v930_v31, %v930_v31  ;;  %v971_v21 = vrot.slane %v930_v31, %v2525_v4  ;;  %v933_v30 = vadd.f32 %v1952_v23, %v932_v34  ;;  %958 = vrot.lane.b32.xlu1 %v930_v31, %s2348_s1  ;;  %v1948_v31 = vld [vmem:[%s2732_s3 + $0x2] ss:$0 sm:$0xff] }
 0x70c   :  { %v1005_v44 = vcombine.high %v1004_v39, %v1004_v39 }
 0x70d   :  { %v978_v22 = vrot.slane %v964_v35, %v2525_v4  ;;  %v979_v36 = vcombine.high %v971_v21, %v971_v21  ;;  %v981_v37 = vcombine.high %v933_v30, %v933_v30  ;;  %v988_v38 = vrot.slane %v933_v30, %v2525_v4  ;;  %960 = vrot.lane.b32.xlu0 %v933_v30, %s2348_s1 }
 0x70e   :  { %v1095_v53 = vrot.slane %v1005_v44, %v2525_v4 }
 0x70f   :  { %v980_v40 = vcombine.high %v978_v22, %v978_v22  ;;  %v1048_v41 = vcombine.low %v971_v21, %v979_v36  ;;  %v995_v42 = vrot.slane %v981_v37, %v2525_v4  ;;  %v996_v43 = vcombine.high %v988_v38, %v988_v38  ;;  %962 = vrot.lane.b32.xlu1 %v938_v33, %s2348_s1 }
 0x710   :  { %v1071_v49 = vrot.slane %v988_v38, %v2525_v4 }
 0x711   :  { %v1049_v45 = vcombine.low %v978_v22, %v980_v40  ;;  %v1056_v46 = vrot.slane %v1048_v41, %v2525_v4  ;;  %v997_v47 = vcombine.high %v995_v42, %v995_v42  ;;  %v1072_v48 = vcombine.low %v996_v43, %v995_v42 }
 0x713   :  { %v1073_v50 = vcombine.low %v997_v47, %v1004_v39  ;;  %v1063_v51 = vrot.slane %v1049_v45, %v2525_v4  ;;  %v1080_v52 = vrot.slane %v1072_v48, %v2525_v4 }
 0x715   :  { %v1064_v54 = vcombine.low %v1056_v46, %v1063_v51  ;;  %v1087_v55 = vrot.slane %v1073_v50, %v2525_v4 }
 0x717   :  { %v2588_v56 = vpack.c.bf16 %v1071_v49, %v1064_v54  ;;  %v1088_v57 = vcombine.low %v1080_v52, %v1087_v55 }
 0x719   :  { %v1160_v58 = vsel %vm179_vm2, %v2588_v56, 0  ;;  %v2592_v59 = vpack.c.bf16 %v1095_v53, %v1088_v57 }
 0x71a   :  { %2124 = vmatpush3.bf16.xpose.msra.mxu0 %v1160_v58 }
 0x71b   :  { %v1206_v60 = vsel %vm179_vm2, %v2592_v59, 0  ;;  %2135 = vmatprep.subr.bf16.mxu0 %v2346_v0 }
 0x71c   :  { %2130 = vmatpush3.bf16.xpose.msra.mxu1 %v1206_v60 }
 0x71d   :  { %2141 = vmatprep.subr.bf16.mxu1 %v2346_v0 }
 0x77d   :  { %v959_v61 = vpop.permute.xlu1 %958 }
 0x77e   :  { %v1006_v63 = vcombine.high %v959_v61, %v959_v61  ;;  %v1013_v2 = vrot.slane %v959_v61, %v2525_v4 }
 0x77f   :  { %v961_v62 = vpop.permute.xlu0 %960 }
 0x780   :  { %v1023_v1 = vcombine.high %v961_v62, %v961_v62  ;;  %v1020_v5 = vrot.slane %v1006_v63, %v2525_v4  ;;  %v1030_v6 = vrot.slane %v961_v62, %v2525_v4  ;;  %v1021_v9 = vcombine.high %v1013_v2, %v1013_v2 }
 0x781   :  { %v963_v8 = vpop.permute.xlu1 %962 }
 0x782   :  { %v1037_v7 = vrot.slane %v1023_v1, %v2525_v4  ;;  %v1022_v10 = vcombine.high %v1020_v5, %v1020_v5  ;;  %v1038_v11 = vcombine.high %v1030_v6, %v1030_v6  ;;  %v1046_v13 = vrot.slane %v963_v8, %v2525_v4 }
 0x783   :  { %v1096_v14 = vcombine.low %v1013_v2, %v1021_v9  ;;  %v1119_v16 = vrot.slane %v1030_v6, %v2525_v4 }
 0x784   :  { %v1039_v12 = vcombine.high %v1037_v7, %v1037_v7  ;;  %v1097_v15 = vcombine.low %v1020_v5, %v1022_v10  ;;  %v1120_v17 = vcombine.low %v1038_v11, %v1037_v7  ;;  %v1047_v25 = vcombine.high %v1046_v13, %v1046_v13 }
 0x785   :  { %v1104_v19 = vrot.slane %v1096_v14, %v2525_v4 }
 0x786   :  { %v1121_v18 = vcombine.low %v1039_v12, %v1046_v13  ;;  %v1111_v20 = vrot.slane %v1097_v15, %v2525_v4  ;;  %v1128_v24 = vrot.slane %v1120_v17, %v2525_v4  ;;  %v1143_v29 = vrot.slane %v1047_v25, %v2525_v4 }
 0x788   :  { %v1135_v26 = vrot.slane %v1121_v18, %v2525_v4  ;;  %v1112_v23 = vcombine.low %v1104_v19, %v1111_v20 }
 0x78a   :  { %v1136_v28 = vcombine.low %v1128_v24, %v1135_v26  ;;  %v2612_v32 = vpack.c.bf16 %v1119_v16, %v1112_v23 }
 0x78c   :  { %v2614_v21 = vpack.c.bf16 %v1143_v29, %v1136_v28  ;;  %v1252_v38 = vsel %vm179_vm2, %v2612_v32, 0 }
 0x78e   :  { %v1298_v40 = vsel %vm179_vm2, %v2614_v21, 0 }
 0x7a7   :  { %v805_v33 = vpop.f32.mrb[16].mxu0 }
 0x7a8   :  { %v806_v34 = vadd.f32 %v1948_v31, %v805_v33  ;;  %v2111_v35 = vpop.f32.mrb[17].mxu0 }
 0x7a9   :  { %v808_v30 = vpop.f32.mrb[18].mxu0 }
 0x7aa   :  { %v951_v22 = vpack.c.bf16 %v806_v34, %v806_v34  ;;  %v809_v36 = vadd.f32 %v1948_v31, %v808_v30  ;;  %v2112_v37 = vpop.f32.mrb[19].mxu0 }
 0x7ac   :  { %v2222_v39 = vpack.i.bf16 %v809_v36, %v806_v34  ;;  %v952_v4 = vpack.c.bf16 %v809_v36, %v809_v36  ;;  %2126 = vmatmul.mubr.msk.bf16.vlgmr.msra.gmra.mrb[20].mxu0 %vm179_vm2, %v951_v22 }
 0x7ad   :  { %2136 = vmatpush3.bf16.xpose.msra.mxu0 %v1252_v38  ;;  %2137 = vmatprep.mubr.msk.bf16.mxu0 %vm2347_vm0, %v2346_v0 }
 0x7ae   :  { %2132 = vmatmul.mubr.msk.bf16.vlgmr.msra.gmra.mrb[28].mxu1 %vm179_vm2, %v952_v4  ;;  %2223 = vrot.lane.b32.xlu1 %v2222_v39, %s2348_s1 }
 0x7af   :  { %2142 = vmatpush3.bf16.xpose.msra.mxu1 %v1298_v40  ;;  %2143 = vmatprep.mubr.msk.bf16.mxu1 %vm2347_vm0, %v2346_v0 }
 0x7b0   :  { %2147 = vmatprep.subr.bf16.mxu0 %v2346_v0  ;;  %2153 = vmatprep.subr.bf16.mxu1 %v2346_v0 }
 0x820   :  { %v2224_v41 = vpop.permute.xlu1 %2223 }
 0x821   :  { %v2226_v42 = vunpack.i.h.bf16 %v2224_v41  ;;  %v2225_v43 = vunpack.i.l.bf16 %v2224_v41 }
 0x823   :  { %v954_v44 = vpack.c.bf16 %v2226_v42, %v2226_v42  ;;  %v953_v45 = vpack.c.bf16 %v2225_v43, %v2225_v43 }
 0x825   :  { %2138 = vmatmul.mubr.msk.bf16.vlgmr.msra.gmra.mrb[24].mxu0 %vm179_vm2, %v953_v45  ;;  %2144 = vmatmul.mubr.msk.bf16.vlgmr.msra.gmra.mrb[32].mxu1 %vm179_vm2, %v954_v44 }
 0x826   :  { %2149 = vmatprep.mubr.msk.bf16.mxu0 %vm2347_vm0, %v2346_v0  ;;  %2155 = vmatprep.mubr.msk.bf16.mxu1 %vm2347_vm0, %v2346_v0 }
 0x87f   :  { %v1196_v46 = vpop.f32.mrb[20].mxu0 }
 0x880   :  { %v1340_v47 = vmul.f32 0.25, %v1196_v46  ;;  %v2127_v48 = vpop.f32.mrb[21].mxu0 }
 0x881   :  { %v1199_v49 = vpop.f32.mrb[22].mxu0  ;;  %v1242_v50 = vpop.f32.mrb[28].mxu1 }
 0x882   :  { %v1341_v51 = vmul.f32 0.25, %v1242_v50  ;;  %v2128_v52 = vpop.f32.mrb[23].mxu0  ;;  %v2133_v53 = vpop.f32.mrb[29].mxu1  ;;  %v1345_v54 = vsel %vm1344_vm7, %v1340_v47, -inf }
 0x883   :  { %v1245_v55 = vpop.f32.mrb[30].mxu1  ;;  %1346 = vmax.xlane.f32.xlu0 %v1345_v54 }
 0x884   :  { %v2134_v57 = vpop.f32.mrb[31].mxu1  ;;  %v1348_v58 = vsel %vm1344_vm7, %v1341_v51, -inf  ;;  %v2243_v55 = vld [vmem:[#allocation2 + $0x48] sm:$0xff]  }
 0x885   :  { %1349 = vmax.xlane.f32.xlu1 %v1348_v58 }
 0x896   :  { %1394 = vrot.lane.b32.xlu1 %v2588_v56, %s2349_s8 }
 0x8f8   :  { %v1288_v60 = vpop.f32.mrb[24].mxu0  ;;  %v1334_v61 = vpop.f32.mrb[32].mxu1 }
 0x8f9   :  { %v1342_v62 = vmul.f32 0.25, %v1288_v60  ;;  %v2139_v63 = vpop.f32.mrb[25].mxu0  ;;  %v2145_v1 = vpop.f32.mrb[33].mxu1  ;;  %v1343_v6 = vmul.f32 0.25, %v1334_v61  ;;  %v2244_v60 = vld [vmem:[#allocation2 + $0x50] sm:$0xff]  }
 0x8fa   :  { %v1291_v2 = vpop.f32.mrb[26].mxu0  ;;  %v1337_v5 = vpop.f32.mrb[34].mxu1 }
 0x8fb   :  { %v2140_v7 = vpop.f32.mrb[27].mxu0  ;;  %v2146_v8 = vpop.f32.mrb[35].mxu1  ;;  %v1351_v9 = vsel %vm1344_vm7, %v1342_v62, -inf  ;;  %v1354_v10 = vsel %vm1344_vm7, %v1343_v6, -inf }
 0x8fc   :  { %1352 = vmax.xlane.f32.xlu0 %v1351_v9 }
 0x900   :  { %1355 = vmax.xlane.f32.xlu0 %v1354_v10 }
 0x910   :  { %v1347_v11 = vpop.xlane.xlu0 %1346 }
 0x911   :  { %v1357_v12 = vsub.f32 %v1340_v47, %v1347_v11 }
 0x912   :  { %v1350_v13 = vpop.xlane.xlu1 %1349 }
 0x913   :  { %v1361_v56 = vmul.f32 1.442695, %v1357_v12  ;;  %v1358_v14 = vsub.f32 %v1341_v51, %v1350_v13 }
 0x915   :  { %2271 = vpow2.f32 %v1361_v56  ;;  %v1363_v15 = vmul.f32 1.442695, %v1358_v14 }
 0x916   :  { %v1395_v17 = vpop.permute.xlu1 %1394 }
 0x917   :  { %2273 = vpow2.f32 %v1363_v15  ;;  %v1401_v18 = vsel %vm1399_vm8, %v1395_v17, 0 }
 0x918   :  { %2148 = vmatpush3.bf16.msra.mxu0 %v1401_v18 }
 0x919   :  { %2159 = vmatprep.subr.bf16.mxu0 %v2346_v0 }
 0x91f   :  { %v2272_v19 = vpop.eup %2271 }
 0x920   :  { %v1369_v20 = vsel %vm1344_vm7, %v2272_v19, 0.0 }
 0x921   :  { %v2274_v24 = vpop.eup %2273  ;;  %1370 = vadd.xlane.f32.xlu1 %v1369_v20 }
 0x922   :  { %v1372_v25 = vsel %vm1344_vm7, %v2274_v24, 0.0 }
 0x923   :  { %1373 = vadd.xlane.f32.xlu0 %v1372_v25 }
 0x989   :  { %v1353_v26 = vpop.xlane.xlu0 %1352 }
 0x98a   :  { %v1359_v16 = vsub.f32 %v1342_v62, %v1353_v26 }
 0x98c   :  { %v1365_v23 = vmul.f32 1.442695, %v1359_v16 }
 0x98d   :  { %v1356_v28 = vpop.xlane.xlu0 %1355 }
 0x98e   :  { %2275 = vpow2.f32 %v1365_v23  ;;  %v1360_v29 = vsub.f32 %v1343_v6, %v1356_v28 }
 0x990   :  { %v1367_v31 = vmul.f32 1.442695, %v1360_v29 }
 0x992   :  { %2277 = vpow2.f32 %v1367_v31 }
 0x998   :  { %v2276_v33 = vpop.eup %2275 }
 0x999   :  { %v1375_v34 = vsel %vm1344_vm7, %v2276_v33, 0.0 }
 0x99a   :  { %1376 = vadd.xlane.f32.xlu1 %v1375_v34 }
 0x99c   :  { %v2278_v35 = vpop.eup %2277 }
 0x99d   :  { %v1378_v30 = vsel %vm1344_vm7, %v2278_v35, 0.0 }
 0x99e   :  { %1379 = vadd.xlane.f32.xlu0 %v1378_v30 }
 0x9ab   :  { %1493 = vrot.lane.b32.xlu1 %v2612_v32, %s2349_s8 }
 0x9ae   :  { %v1371_v22 = vpop.xlane.xlu1 %1370 }
 0x9af   :  { %2279 = vrcp.f32 %v1371_v22  ;;  %1542 = vrot.lane.b32.xlu1 %v2614_v21, %s2349_s8 }
 0x9b0   :  { %v1374_v39 = vpop.xlane.xlu0 %1373 }
 0x9b1   :  { %2281 = vrcp.f32 %v1374_v39 }
 0x9b4   :  { %1444 = vrot.lane.b32.xlu0 %v2592_v59, %s2349_s8 }
 0x9b9   :  { %v2280_v36 = vpop.eup %2279 }
 0x9ba   :  { %v1385_v37 = vmul.f32 %v2280_v36, %v2272_v19  ;;  %v1966_v19 = vld [vmem:[%s2732_s3 + $0x4] ss:$0 sm:$0xff]  ;;  %v2245_v36 = vld [vmem:[#allocation2 + $0x58] sm:$0xff]  }
 0x9bb   :  { %v2282_v32 = vpop.eup %2281 }
 0x9bc   :  { %v1389_v38 = vpack.c.bf16 %v1385_v37, %v1385_v37  ;;  %v1386_v59 = vmul.f32 %v2282_v32, %v2274_v24  ;;  %v2248_v37 = vld [vmem:[#allocation2 + $0x70] sm:$0xff]  }
 0x9be   :  { %2150 = vmatmul.mubr.msk.bf16.vlgmr.msra.gmra.mrb[28].mxu0 %vm1344_vm7, %v1389_v38  ;;  %v1390_v46 = vpack.c.bf16 %v1386_v59, %v1386_v59 }
 0x9bf   :  { %2161 = vmatprep.mubr.msk.bf16.mxu0 %vm2347_vm0, %v2346_v0 }
 0xa27   :  { %v1377_v4 = vpop.xlane.xlu1 %1376 }
 0xa28   :  { %2283 = vrcp.f32 %v1377_v4 }
 0xa2b   :  { %v1494_v40 = vpop.permute.xlu1 %1493  ;;  %v1380_v41 = vpop.xlane.xlu0 %1379 }
 0xa2c   :  { %v1499_v21 = vsel %vm1399_vm8, %v1494_v40, 0  ;;  %2285 = vrcp.f32 %v1380_v41 }
 0xa2d   :  { %2160 = vmatpush3.bf16.msra.mxu0 %v1499_v21 }
 0xa2e   :  { %2171 = vmatprep.subr.bf16.mxu0 %v2346_v0 }
 0xa2f   :  { %v1445_v42 = vpop.permute.xlu0 %1444  ;;  %v1543_v44 = vpop.permute.xlu1 %1542 }
 0xa30   :  { %v1450_v43 = vsel %vm1399_vm8, %v1445_v42, 0  ;;  %v1548_v48 = vsel %vm1399_vm8, %v1543_v44, 0 }
 0xa31   :  { %2154 = vmatpush3.bf16.msra.mxu1 %v1450_v43 }
 0xa32   :  { %v2284_v45 = vpop.eup %2283  ;;  %2165 = vmatprep.subr.bf16.mxu1 %v2346_v0 }
 0xa33   :  { %v1387_v47 = vmul.f32 %v2284_v45, %v2276_v33 }
 0xa34   :  { %2156 = vmatmul.mubr.msk.bf16.vlgmr.msra.gmra.mrb[36].mxu1 %vm1344_vm7, %v1390_v46 }
 0xa35   :  { %2166 = vmatpush3.bf16.msra.mxu1 %v1548_v48  ;;  %v1391_v49 = vpack.c.bf16 %v1387_v47, %v1387_v47  ;;  %2167 = vmatprep.mubr.msk.bf16.mxu1 %vm2347_vm0, %v2346_v0 }
 0xa36   :  { %v2286_v50 = vpop.eup %2285  ;;  %2179 = vmatprep.subr.bf16.mxu1 %v2346_v0 }
 0xa37   :  { %v1388_v51 = vmul.f32 %v2286_v50, %v2278_v35  ;;  %2162 = vmatmul.mubr.msk.bf16.vlgmr.msra.gmra.mrb[32].mxu0 %vm1344_vm7, %v1391_v49  ;;  %v1970_v50 = vld [vmem:[%s2732_s3 + $0x9] ss:$0 sm:$0xff] }
 0xa38   :  { %2175 = vmatprep.mubr.msk.bf16.mxu0 %vm2347_vm0, %v2346_v0  ;;  %2172 = vmatpush3.bf16.msra.mxu0 %v2243_v55 }
 0xa39   :  { %v1392_v52 = vpack.c.bf16 %v1388_v51, %v1388_v51  ;;  %2173 = vmatprep.subr.bf16.mxu0 %v2346_v0 }
 0xa3c   :  { %2168 = vmatmul.mubr.msk.bf16.vlgmr.msra.gmra.mrb[40].mxu1 %vm1344_vm7, %v1392_v52  ;;  %2174 = vmatpush3.bf16.msra.mxu0 %v2244_v60 }
 0xa3d   :  { %2183 = vmatprep.mubr.msk.bf16.mxu1 %vm2347_vm0, %v2346_v0  ;;  %2187 = vmatprep.subr.bf16.mxu0 %v2346_v0 }
 0xa3e   :  { %2180 = vmatpush3.bf16.msra.mxu1 %v2245_v36 }
 0xa3f   :  { %2181 = vmatprep.subr.bf16.mxu1 %v2346_v0 }
 0xa91   :  { %v1437_v53 = vpop.f32.mrb[28].mxu0 }
 0xa92   :  { %v2151_v54 = vpop.f32.mrb[29].mxu0 }
 0xa93   :  { %v1440_v57 = vpop.f32.mrb[30].mxu0 }
 0xa94   :  { %v2152_v58 = vpop.f32.mrb[31].mxu0  ;;  %v1971_v57 = vld [vmem:[%s2732_s3 + $0xa] ss:$0 sm:$0xff] }
 0xb07   :  { %v1486_v61 = vpop.f32.mrb[36].mxu1 }
 0xb08   :  { %v2157_v62 = vpop.f32.mrb[37].mxu1 }
 0xb09   :  { %v1489_v63 = vpop.f32.mrb[38].mxu1 }
 0xb0a   :  { %v2158_v1 = vpop.f32.mrb[39].mxu1  ;;  %v1535_v2 = vpop.f32.mrb[32].mxu0  ;;  %v2249_v63 = vld [vmem:[#allocation2 + $0x78] sm:$0xff]  }
 0xb0b   :  { %v2163_v5 = vpop.f32.mrb[33].mxu0  ;;  %v2250_v1 = vld [vmem:[#allocation2 + $0x80] sm:$0xff]  }
 0xb0c   :  { %v1538_v6 = vpop.f32.mrb[34].mxu0 }
 0xb0d   :  { %v2164_v7 = vpop.f32.mrb[35].mxu0 }
 0xb0f   :  { %v1584_v8 = vpop.f32.mrb[40].mxu1 }
 0xb10   :  { %v2227_v9 = vpack.i.bf16 %v1584_v8, %v1535_v2  ;;  %v2169_v10 = vpop.f32.mrb[41].mxu1  ;;  %v1972_v2 = vld [vmem:[%s2732_s3 + $0x5] ss:$0 sm:$0xff] }
 0xb11   :  { %v1587_v11 = vpop.f32.mrb[42].mxu1 }
 0xb12   :  { %v2170_v12 = vpop.f32.mrb[43].mxu1  ;;  %2228 = vrot.lane.b32.xlu0 %v2227_v9, %s2351_s9 }
 0xb84   :  { %v2229_v13 = vpop.permute.xlu0 %2228 }
 0xb85   :  { %v2231_v56 = vunpack.i.h.bf16 %v2229_v13  ;;  %v2230_v14 = vunpack.i.l.bf16 %v2229_v13 }
 0xb87   :  { %v1599_v15 = vsel %vm179_vm2, %v1486_v61, %v2231_v56  ;;  %v1598_v17 = vsel %vm179_vm2, %v1437_v53, %v2230_v14 }
 0xb88   :  { %v1600_v18 = vpack.c.bf16 %v1599_v15, %v1598_v17 }
 0xb8a   :  { %2176 = vmatmul.mubr.msk.bf16.vlgmr.msra.gmra.mrb[36].mxu0 %vm119_vm1, %v1600_v18 }
 0xb8b   :  { %2195 = vmatprep.mubr.msk.bf16.mxu0 %vm2347_vm0, %v2346_v0 }
 0xc5d   :  { %v1659_v20 = vpop.f32.mrb[36].mxu0 }
 0xc5e   :  { %v1660_v24 = vadd.f32 %v1966_v19, %v1659_v20  ;;  %v2177_v25 = vpop.f32.mrb[37].mxu0 }
 0xc5f   :  { %v1662_v26 = vpop.f32.mrb[38].mxu0 }
 0xc60   :  { %v1666_v16 = vadd.f32 %v1660_v24, %v2562_v27  ;;  %v1663_v23 = vadd.f32 %v1966_v19, %v1662_v26  ;;  %v2178_v28 = vpop.f32.mrb[39].mxu0  ;;  %v2246_v27 = vld [vmem:[#allocation2 + $0x60] sm:$0xff]  }
 0xc61   :  { %2182 = vmatpush3.bf16.msra.mxu1 %v2246_v27 }
 0xc62   :  { %v1667_v29 = vadd.f32 %v1663_v23, %v2564_v3  ;;  %v1668_v31 = vsel %vm119_vm1, %v1666_v16, 0.0  ;;  %v1676_v35 = vmul.f32 %v1666_v16, %v1666_v16  ;;  %v2247_v3 = vld [vmem:[#allocation2 + $0x68] sm:$0xff]  }
 0xc63   :  { %1669 = vadd.xlane.f32.xlu1 %v1668_v31  ;;  %2188 = vmatpush3.bf16.msra.mxu0 %v2247_v3 }
 0xc64   :  { %v1671_v33 = vsel %vm119_vm1, %v1667_v29, 0.0  ;;  %v1677_v34 = vmul.f32 %v1667_v29, %v1667_v29  ;;  %v1678_v22 = vsel %vm119_vm1, %v1676_v35, 0.0  ;;  %2189 = vmatprep.subr.bf16.mxu0 %v2346_v0 }
 0xc65   :  { %1672 = vadd.xlane.f32.xlu0 %v1671_v33 }
 0xc66   :  { %v1681_v30 = vsel %vm119_vm1, %v1677_v34, 0.0 }
 0xc67   :  { %1682 = vadd.xlane.f32.xlu1 %v1681_v30  ;;  %2190 = vmatpush3.bf16.msra.mxu0 %v2248_v37 }
 0xc68   :  { %2191 = vmatprep.subr.bf16.mxu0 %v2346_v0 }
 0xc69   :  { %1679 = vadd.xlane.f32.xlu0 %v1678_v22 }
 0xc6b   :  { %2192 = vmatpush3.bf16.msra.mxu0 %v2249_v63 }
 0xc6c   :  { %2193 = vmatprep.subr.bf16.mxu0 %v2346_v0  ;;  %v1976_v0 = vld [vmem:[%s2732_s3 + $0x6] ss:$0 sm:$0xff] }
 0xc6f   :  { %2194 = vmatpush3.bf16.msra.mxu0 %v2250_v1 }
 0xcf0   :  { %v1670_v38 = vpop.xlane.xlu1 %1669 }
 0xcf1   :  { %v1674_v4 = vmul.f32 0.03125, %v1670_v38 }
 0xcf2   :  { %v1673_v39 = vpop.xlane.xlu0 %1672 }
 0xcf3   :  { %v1675_v32 = vmul.f32 0.03125, %v1673_v39  ;;  %v1686_v42 = vmul.f32 %v1674_v4, %v1674_v4  ;;  %v1690_v51 = vsub.f32 %v1666_v16, %v1674_v4 }
 0xcf4   :  { %v1683_v40 = vpop.xlane.xlu1 %1682 }
 0xcf5   :  { %v1687_v41 = vmul.f32 %v1675_v32, %v1675_v32  ;;  %v1685_v21 = vmul.f32 0.03125, %v1683_v40  ;;  %v1691_v48 = vsub.f32 %v1667_v29, %v1675_v32 }
 0xcf6   :  { %v1680_v59 = vpop.xlane.xlu0 %1679 }
 0xcf7   :  { %v1689_v43 = vsub.f32 %v1685_v21, %v1687_v41  ;;  %v1684_v44 = vmul.f32 0.03125, %v1680_v59  ;;  %v1982_v21 = vld [vmem:[%s2732_s3 + $0xb] ss:$0 sm:$0xff] }
 0xcf9   :  { %v1693_v45 = vadd.f32 1e-05, %v1689_v43  ;;  %v1688_v46 = vsub.f32 %v1684_v44, %v1686_v42  ;;  %v1983_v44 = vld [vmem:[%s2732_s3 + $0xc] ss:$0 sm:$0xff] }
 0xcfb   :  { %2287 = vrsqrt.f32 %v1693_v45  ;;  %v1692_v47 = vadd.f32 1e-05, %v1688_v46 }
 0xcfd   :  { %2289 = vrsqrt.f32 %v1692_v47 }
 0xd05   :  { %v2288_v49 = vpop.eup %2287 }
 0xd06   :  { %v1697_v52 = vmul.f32 %v2288_v49, %v1691_v48 }
 0xd07   :  { %v2290_v53 = vpop.eup %2289 }
 0xd08   :  { %v1696_v54 = vmul.f32 %v2290_v53, %v1690_v51  ;;  %v1704_v55 = vmul.f32 %v1970_v50, %v1697_v52 }
 0xd0a   :  { %v1703_v58 = vmul.f32 %v1970_v50, %v1696_v54  ;;  %v1711_v61 = vadd.f32 %v1971_v57, %v1704_v55 }
 0xd0c   :  { %v1710_v60 = vadd.f32 %v1971_v57, %v1703_v58 }
 0xd0e   :  { %v1712_v62 = vpack.c.bf16 %v1711_v61, %v1710_v60 }
 0xd10   :  { %2184 = vmatmul.mubr.msk.bf16.vlgmr.msra.gmra.mrb[44].mxu1 %vm119_vm1, %v1712_v62 }
 0xde3   :  { %v1771_v5 = vpop.f32.mrb[44].mxu1 }
 0xde4   :  { %v1772_v6 = vadd.f32 %v1972_v2, %v1771_v5  ;;  %v2185_v7 = vpop.f32.mrb[45].mxu1 }
 0xde5   :  { %v1774_v8 = vpop.f32.mrb[46].mxu1 }
 0xde6   :  { %v1775_v9 = vadd.f32 %v1972_v2, %v1774_v8  ;;  %v2186_v10 = vpop.f32.mrb[47].mxu1  ;;  %v1778_v11 = vmax.f32 %v1772_v6, 0.0 }
 0xde8   :  { %v1779_v12 = vmax.f32 %v1775_v9, 0.0 }
 0xdea   :  { %v1780_v13 = vpack.c.bf16 %v1779_v12, %v1778_v11 }
 0xdec   :  { %2196 = vmatmul.mubr.msk.bf16.vlgmr.msra.gmra.mrb[40].mxu0 %vm1818_vm9, %v1780_v13 }
 0xebf   :  { %v1856_v56 = vpop.f32.mrb[40].mxu0 }
 0xec0   :  { %v1857_v14 = vadd.f32 %v1976_v0, %v1856_v56  ;;  %v2197_v15 = vpop.f32.mrb[41].mxu0 }
 0xec1   :  { %v1859_v17 = vpop.f32.mrb[42].mxu0 }
 0xec2   :  { %v1863_v18 = vadd.f32 %v1857_v14, %v1710_v60  ;;  %v1860_v19 = vadd.f32 %v1976_v0, %v1859_v17  ;;  %v2198_v20 = vpop.f32.mrb[43].mxu0 }
 0xec4   :  { %v1864_v24 = vadd.f32 %v1860_v19, %v1711_v61  ;;  %v1865_v25 = vsel %vm119_vm1, %v1863_v18, 0.0  ;;  %v1873_v26 = vmul.f32 %v1863_v18, %v1863_v18 }
 0xec5   :  { %1866 = vadd.xlane.f32.xlu0 %v1865_v25 }
 0xec6   :  { %v1868_v16 = vsel %vm119_vm1, %v1864_v24, 0.0  ;;  %v1874_v23 = vmul.f32 %v1864_v24, %v1864_v24  ;;  %v1875_v28 = vsel %vm119_vm1, %v1873_v26, 0.0 }
 0xec7   :  { %1869 = vadd.xlane.f32.xlu1 %v1868_v16 }
 0xec8   :  { %v1878_v29 = vsel %vm119_vm1, %v1874_v23, 0.0 }
 0xec9   :  { %1876 = vadd.xlane.f32.xlu0 %v1875_v28 }
 0xecb   :  { %1879 = vadd.xlane.f32.xlu1 %v1878_v29 }
 0xf52   :  { %v1867_v31 = vpop.xlane.xlu0 %1866 }
 0xf53   :  { %v1871_v33 = vmul.f32 0.03125, %v1867_v31 }
 0xf54   :  { %v1870_v34 = vpop.xlane.xlu1 %1869 }
 0xf55   :  { %v1872_v35 = vmul.f32 0.03125, %v1870_v34  ;;  %v1883_v22 = vmul.f32 %v1871_v33, %v1871_v33  ;;  %v1887_v40 = vsub.f32 %v1863_v18, %v1871_v33 }
 0xf56   :  { %v1877_v30 = vpop.xlane.xlu0 %1876 }
 0xf57   :  { %v1881_v36 = vmul.f32 0.03125, %v1877_v30  ;;  %v1884_v3 = vmul.f32 %v1872_v35, %v1872_v35  ;;  %v1888_v59 = vsub.f32 %v1864_v24, %v1872_v35 }
 0xf58   :  { %v1880_v27 = vpop.xlane.xlu1 %1879 }
 0xf59   :  { %v1885_v37 = vsub.f32 %v1881_v36, %v1883_v22  ;;  %v1882_v38 = vmul.f32 0.03125, %v1880_v27 }
 0xf5b   :  { %v1889_v39 = vadd.f32 1e-05, %v1885_v37  ;;  %v1886_v4 = vsub.f32 %v1882_v38, %v1884_v3 }
 0xf5d   :  { %2291 = vrsqrt.f32 %v1889_v39  ;;  %v1890_v32 = vadd.f32 1e-05, %v1886_v4 }
 0xf5f   :  { %2293 = vrsqrt.f32 %v1890_v32 }
 0xf67   :  { %v2292_v41 = vpop.eup %2291 }
 0xf68   :  { %v1893_v42 = vmul.f32 %v2292_v41, %v1887_v40 }
 0xf69   :  { %v2294_v43 = vpop.eup %2293 }
 0xf6a   :  { %v1894_v45 = vmul.f32 %v2294_v43, %v1888_v59  ;;  %v1900_v46 = vmul.f32 %v1982_v21, %v1893_v42 }
 0xf6c   :  { %v1901_v47 = vmul.f32 %v1982_v21, %v1894_v45  ;;  %v1907_v48 = vadd.f32 %v1983_v44, %v1900_v46 }
 0xf6e   :  { %v1908_v49 = vadd.f32 %v1983_v44, %v1901_v47  ;;  %1909 = vst.msk [vmem:[#allocation5] sm:$0xff] %vm119_vm1, %v1907_v48 }
 0xf70   :  { %1910 = vst.msk [vmem:[#allocation5 + $0x8] sm:$0xff] %vm119_vm1, %v1908_v49 }
 0xf71   :  { %2328 = shalt.err (!%p2325_p12)
}
 0xf72   :  { %s2329_s17 = scalar_lea.hbm %s2733_s4, 256 }
 0xf73   :  { %p2330_p13 = scmp.ne.s32.totalorder %s2733_s4, %s2329_s17  ;;  %p2333_p0 = scmp.lt.u32.totalorder %s2329_s17, %s2733_s4 }
 0xf75   :  { %p2335_p1 = pnand %p2333_p0, %p2330_p13 }
 0xf77   :  { %2338 = shalt.err (!%p2335_p1)
}
 0xf78   :  { %s2354_s21 = smov 128   ;;  %s2355_s22 = smov 8  }
 0xf79   :  { %1922 = dma.vmem_to_hbm [thread:$0]  %s1917_s14, 256, %s2733_s4, [#allocation4], %s2354_s21, %s2354_s21, %s2355_s22  }
 0xf7a   :  { %2341 = dma.done.wait [#allocation4], 256  }
 0xf7b   :  { %2342 = vsyncadd [#allocation4], 4294967040 }
 0xf7c   :  { %1926 = vsyncpa [#allocation3], 1 }
 0xf7d   :  { %1927 = vsyncpa [#allocation4], 1 }

</bundles_post_ra>
